<compile_context>
chip_gen: v6e
topology: v6e:2x2x1
jax: 0.10.0
libtpu: 0.0.40
codegen_flags: <defaults>
</compile_context>

<pallas_src>
import jax
import jax.numpy as jnp
from jax.experimental import pallas as pl
from jax.experimental.pallas import tpu as pltpu

LANES = 128
LAYER_DIMS = [(3, 6), (6, 8), (8, 6), (6, 3)]
MAX_BLOCK_ROWS = 512          # cap per-step sublane rows (~768 KiB/buffer) for huge B
CHUNK_ROWS = 8                # sublane rows processed per in-kernel chunk


def _param_offsets():
    offs, o = [], 0
    for fin, fout in LAYER_DIMS:
        w_off = o
        o += fin * fout
        b_off = o
        o += fout
        offs.append((w_off, b_off))
    return offs, o


PARAM_OFFSETS, NUM_PARAMS = _param_offsets()   # 155 scalars total


def pack_params(params):
    """Flatten all weights/biases into one f32[NUM_PARAMS] vector (SMEM operand)."""
    flat = []
    for idx in range(1, len(LAYER_DIMS) + 1):
        flat.append(params[f"w{idx}"].reshape(-1))   # (fin, fout) row-major
        flat.append(params[f"b{idx}"].reshape(-1))
    return jnp.concatenate(flat).astype(jnp.float32)


def mlp_kernel(p_ref, x_ref, o_ref):
    """p_ref: SMEM f32[155].  x_ref / o_ref: (3, block_rows, 128) VMEM tiles.
    All math is VPU scalar-broadcast FMAs; the MXU is never engaged."""
    block_rows = x_ref.shape[1]
    chunk = CHUNK_ROWS if block_rows % CHUNK_ROWS == 0 else block_rows
    n_chunks = block_rows // chunk

    # Hoist every SMEM scalar read out of the chunk loop (155 loads per grid step,
    # reused across all chunks).
    w, b = [], []
    for (w_off, b_off), (fin, fout) in zip(PARAM_OFFSETS, LAYER_DIMS):
        w.append([[p_ref[w_off + k * fout + j] for j in range(fout)]
                  for k in range(fin)])
        b.append([p_ref[b_off + j] for j in range(fout)])

    # Static unroll over (chunk, 128) sublane chunks.  Each chunk stores its
    # outputs before the next begins, so the live set stays ~14 vregs (no spills)
    # even when block_rows is large.
    for c in range(n_chunks):
        r0 = c * chunk
        h = [x_ref[f, r0:r0 + chunk, :] for f in range(3)]
        n_layers = len(LAYER_DIMS)
        for li, (fin, fout) in enumerate(LAYER_DIMS):
            apply_relu = li < n_layers - 1
            nxt = []
            for j in range(fout):
                # bias folded into the first FMA of the chain
                acc = h[0] * w[li][0][j] + b[li][j]
                for k in range(1, fin):
                    acc = acc + h[k] * w[li][k][j]
                if apply_relu:
                    acc = jnp.maximum(acc, 0.0)
                nxt.append(acc)
            h = nxt
        for f in range(3):
            o_ref[f, r0:r0 + chunk, :] = h[f]


def _choose_num_steps(nrb):
    """Prefer 2 parallel grid steps (megacore on v7x; near-free on v5e/v6e),
    growing only if the per-step tile would get needlessly large."""
    if nrb % 16 != 0:          # can't split into two 8-multiple halves -> 1 step
        return 1
    steps = 2
    while nrb // steps > MAX_BLOCK_ROWS and nrb % (steps * 2) == 0:
        steps *= 2
    return steps


def my_model_forward_feature_major(x_fm, packed_params):
    """Fast path.  x_fm: (3, B//128, 128) float32 (feature-major, lane-dense).
    Returns the same layout.  No wrapper-side transposes / extra XLA passes."""
    three, nrb, lanes = x_fm.shape
    assert three == 3 and lanes == LANES

    num_steps = _choose_num_steps(nrb)
    block_rows = nrb // num_steps

    macs = nrb * LANES * sum(i * o for i, o in LAYER_DIMS)
    cost = pl.CostEstimate(
        flops=2 * macs,
        transcendentals=0,
        bytes_accessed=2 * nrb * LANES * 3 * 4 + NUM_PARAMS * 4,
    )

    return pl.pallas_call(
        mlp_kernel,
        out_shape=jax.ShapeDtypeStruct((3, nrb, LANES), x_fm.dtype),
        grid=(num_steps,),
        in_specs=[
            pl.BlockSpec(memory_space=pltpu.MemorySpace.SMEM),          # packed params
            pl.BlockSpec((3, block_rows, LANES), lambda i: (0, i, 0)),  # x tile
        ],
        out_specs=pl.BlockSpec((3, block_rows, LANES), lambda i: (0, i, 0)),
        compiler_params=pltpu.CompilerParams(
            dimension_semantics=("parallel",)),
        cost_estimate=cost,
    )(packed_params, x_fm)


def my_model_forward(x, params):
    """Compatibility path with the original module's (B, 3) -> (B, 3) signature.
    Pads B up to a multiple of 128 and converts to/from the feature-major layout
    (one transpose each way).  Prefer my_model_forward_feature_major when the
    caller can supply (3, B//128, 128) directly."""
    B, din = x.shape
    assert din == 3
    Bp = ((B + LANES - 1) // LANES) * LANES
    if Bp != B:
        x = jnp.pad(x, ((0, Bp - B), (0, 0)))
    nrb = Bp // LANES
    x_fm = jnp.transpose(x).reshape(3, nrb, LANES)
    out_fm = my_model_forward_feature_major(x_fm, pack_params(params))
    out = jnp.transpose(out_fm.reshape(3, Bp))
    return out[:B]


def init_params(key):
    """Deterministic init mimicking nn.Linear's U(-1/sqrt(fan_in), 1/sqrt(fan_in)).
    Weights stored as (in, out) so forward is x @ W + b (PyTorch stores (out, in))."""
    params = {}
    for idx, (fan_in, fan_out) in enumerate(LAYER_DIMS, start=1):
        key, kw, kb = jax.random.split(key, 3)
        bound = 1.0 / jnp.sqrt(jnp.float32(fan_in))
        params[f"w{idx}"] = jax.random.uniform(
            kw, (fan_in, fan_out), jnp.float32, -bound, bound)
        params[f"b{idx}"] = jax.random.uniform(
            kb, (fan_out,), jnp.float32, -bound, bound)
    return params


def reference_forward(x, params):
    h = x
    for idx in range(1, 5):
        h = jnp.dot(h, params[f"w{idx}"],
                    precision=jax.lax.Precision.HIGHEST) + params[f"b{idx}"]
        if idx < 4:
            h = jnp.maximum(h, 0.0)
    return h


if __name__ == "__main__":
    key = jax.random.PRNGKey(0)
    key, kx = jax.random.split(key)
    params = init_params(key)
    packed = pack_params(params)

    # Fast path: feature-major input (3, 16, 128)  <=>  2048 rows of 3 features.
    # Grid = 2 parallel steps (both TensorCores on v7x), 1024 rows / step.
    B = 2048
    nrb = B // LANES
    x_fm = jax.random.normal(kx, (3, nrb, LANES), jnp.float32)
    x = jnp.transpose(x_fm.reshape(3, B))           # logical (B, 3) view for the reference

    out_fm = jax.block_until_ready(my_model_forward_feature_major(x_fm, packed))
    out = jnp.transpose(out_fm.reshape(3, B))
    ref = reference_forward(x, params)
    assert out.shape == (B, 3)
    assert jnp.allclose(out, ref, atol=1e-4, rtol=1e-4), (
        float(jnp.max(jnp.abs(out - ref))))

    # Compatibility path: arbitrary (B, 3) batch (padded internally to 128 rows).
    x_small = jax.random.normal(jax.random.PRNGKey(1), (200, 3), jnp.float32)
    out_small = jax.block_until_ready(my_model_forward(x_small, params))
    ref_small = reference_forward(x_small, params)
    assert out_small.shape == (200, 3)
    assert jnp.allclose(out_small, ref_small, atol=1e-4, rtol=1e-4), (
        float(jnp.max(jnp.abs(out_small - ref_small))))

    print("KERNEL_OK")
</pallas_src>

<mosaic_0001>
module attributes {stable_mosaic.version = 11 : i64} {
  func.func @mlp_kernel(%arg0: i32, %arg1: memref<155xf32, #tpu.memory_space<smem>>, %arg2: memref<3x8x128xf32, #tpu.memory_space<vmem>>, %arg3: memref<3x8x128xf32, #tpu.memory_space<vmem>>) attributes {dimension_semantics = [#tpu.dimension_semantics<parallel>], iteration_bounds = array<i64: 2>, scalar_prefetch = 0 : i64, scratch_operands = 0 : i64, tpu.core_type = #tpu.core_type<tc>, window_params = [{transform_indices = @transform_0, window_bounds = array<i64: 155>}, {transform_indices = @transform_1, window_bounds = array<i64: 3, 8, 128>}, {transform_indices = @transform_2, window_bounds = array<i64: 3, 8, 128>}]} {
    %c0 = arith.constant 0 : index
    %0 = memref.load %arg1[%c0] : memref<155xf32, #tpu.memory_space<smem>>
    %c1 = arith.constant 1 : index
    %1 = memref.load %arg1[%c1] : memref<155xf32, #tpu.memory_space<smem>>
    %c2 = arith.constant 2 : index
    %2 = memref.load %arg1[%c2] : memref<155xf32, #tpu.memory_space<smem>>
    %c3 = arith.constant 3 : index
    %3 = memref.load %arg1[%c3] : memref<155xf32, #tpu.memory_space<smem>>
    %c4 = arith.constant 4 : index
    %4 = memref.load %arg1[%c4] : memref<155xf32, #tpu.memory_space<smem>>
    %c5 = arith.constant 5 : index
    %5 = memref.load %arg1[%c5] : memref<155xf32, #tpu.memory_space<smem>>
    %c6 = arith.constant 6 : index
    %6 = memref.load %arg1[%c6] : memref<155xf32, #tpu.memory_space<smem>>
    %c7 = arith.constant 7 : index
    %7 = memref.load %arg1[%c7] : memref<155xf32, #tpu.memory_space<smem>>
    %c8 = arith.constant 8 : index
    %8 = memref.load %arg1[%c8] : memref<155xf32, #tpu.memory_space<smem>>
    %c9 = arith.constant 9 : index
    %9 = memref.load %arg1[%c9] : memref<155xf32, #tpu.memory_space<smem>>
    %c10 = arith.constant 10 : index
    %10 = memref.load %arg1[%c10] : memref<155xf32, #tpu.memory_space<smem>>
    %c11 = arith.constant 11 : index
    %11 = memref.load %arg1[%c11] : memref<155xf32, #tpu.memory_space<smem>>
    %c12 = arith.constant 12 : index
    %12 = memref.load %arg1[%c12] : memref<155xf32, #tpu.memory_space<smem>>
    %c13 = arith.constant 13 : index
    %13 = memref.load %arg1[%c13] : memref<155xf32, #tpu.memory_space<smem>>
    %c14 = arith.constant 14 : index
    %14 = memref.load %arg1[%c14] : memref<155xf32, #tpu.memory_space<smem>>
    %c15 = arith.constant 15 : index
    %15 = memref.load %arg1[%c15] : memref<155xf32, #tpu.memory_space<smem>>
    %c16 = arith.constant 16 : index
    %16 = memref.load %arg1[%c16] : memref<155xf32, #tpu.memory_space<smem>>
    %c17 = arith.constant 17 : index
    %17 = memref.load %arg1[%c17] : memref<155xf32, #tpu.memory_space<smem>>
    %c18 = arith.constant 18 : index
    %18 = memref.load %arg1[%c18] : memref<155xf32, #tpu.memory_space<smem>>
    %c19 = arith.constant 19 : index
    %19 = memref.load %arg1[%c19] : memref<155xf32, #tpu.memory_space<smem>>
    %c20 = arith.constant 20 : index
    %20 = memref.load %arg1[%c20] : memref<155xf32, #tpu.memory_space<smem>>
    %c21 = arith.constant 21 : index
    %21 = memref.load %arg1[%c21] : memref<155xf32, #tpu.memory_space<smem>>
    %c22 = arith.constant 22 : index
    %22 = memref.load %arg1[%c22] : memref<155xf32, #tpu.memory_space<smem>>
    %c23 = arith.constant 23 : index
    %23 = memref.load %arg1[%c23] : memref<155xf32, #tpu.memory_space<smem>>
    %c24 = arith.constant 24 : index
    %24 = memref.load %arg1[%c24] : memref<155xf32, #tpu.memory_space<smem>>
    %c25 = arith.constant 25 : index
    %25 = memref.load %arg1[%c25] : memref<155xf32, #tpu.memory_space<smem>>
    %c26 = arith.constant 26 : index
    %26 = memref.load %arg1[%c26] : memref<155xf32, #tpu.memory_space<smem>>
    %c27 = arith.constant 27 : index
    %27 = memref.load %arg1[%c27] : memref<155xf32, #tpu.memory_space<smem>>
    %c28 = arith.constant 28 : index
    %28 = memref.load %arg1[%c28] : memref<155xf32, #tpu.memory_space<smem>>
    %c29 = arith.constant 29 : index
    %29 = memref.load %arg1[%c29] : memref<155xf32, #tpu.memory_space<smem>>
    %c30 = arith.constant 30 : index
    %30 = memref.load %arg1[%c30] : memref<155xf32, #tpu.memory_space<smem>>
    %c31 = arith.constant 31 : index
    %31 = memref.load %arg1[%c31] : memref<155xf32, #tpu.memory_space<smem>>
    %c32 = arith.constant 32 : index
    %32 = memref.load %arg1[%c32] : memref<155xf32, #tpu.memory_space<smem>>
    %c33 = arith.constant 33 : index
    %33 = memref.load %arg1[%c33] : memref<155xf32, #tpu.memory_space<smem>>
    %c34 = arith.constant 34 : index
    %34 = memref.load %arg1[%c34] : memref<155xf32, #tpu.memory_space<smem>>
    %c35 = arith.constant 35 : index
    %35 = memref.load %arg1[%c35] : memref<155xf32, #tpu.memory_space<smem>>
    %c36 = arith.constant 36 : index
    %36 = memref.load %arg1[%c36] : memref<155xf32, #tpu.memory_space<smem>>
    %c37 = arith.constant 37 : index
    %37 = memref.load %arg1[%c37] : memref<155xf32, #tpu.memory_space<smem>>
    %c38 = arith.constant 38 : index
    %38 = memref.load %arg1[%c38] : memref<155xf32, #tpu.memory_space<smem>>
    %c39 = arith.constant 39 : index
    %39 = memref.load %arg1[%c39] : memref<155xf32, #tpu.memory_space<smem>>
    %c40 = arith.constant 40 : index
    %40 = memref.load %arg1[%c40] : memref<155xf32, #tpu.memory_space<smem>>
    %c41 = arith.constant 41 : index
    %41 = memref.load %arg1[%c41] : memref<155xf32, #tpu.memory_space<smem>>
    %c42 = arith.constant 42 : index
    %42 = memref.load %arg1[%c42] : memref<155xf32, #tpu.memory_space<smem>>
    %c43 = arith.constant 43 : index
    %43 = memref.load %arg1[%c43] : memref<155xf32, #tpu.memory_space<smem>>
    %c44 = arith.constant 44 : index
    %44 = memref.load %arg1[%c44] : memref<155xf32, #tpu.memory_space<smem>>
    %c45 = arith.constant 45 : index
    %45 = memref.load %arg1[%c45] : memref<155xf32, #tpu.memory_space<smem>>
    %c46 = arith.constant 46 : index
    %46 = memref.load %arg1[%c46] : memref<155xf32, #tpu.memory_space<smem>>
    %c47 = arith.constant 47 : index
    %47 = memref.load %arg1[%c47] : memref<155xf32, #tpu.memory_space<smem>>
    %c48 = arith.constant 48 : index
    %48 = memref.load %arg1[%c48] : memref<155xf32, #tpu.memory_space<smem>>
    %c49 = arith.constant 49 : index
    %49 = memref.load %arg1[%c49] : memref<155xf32, #tpu.memory_space<smem>>
    %c50 = arith.constant 50 : index
    %50 = memref.load %arg1[%c50] : memref<155xf32, #tpu.memory_space<smem>>
    %c51 = arith.constant 51 : index
    %51 = memref.load %arg1[%c51] : memref<155xf32, #tpu.memory_space<smem>>
    %c52 = arith.constant 52 : index
    %52 = memref.load %arg1[%c52] : memref<155xf32, #tpu.memory_space<smem>>
    %c53 = arith.constant 53 : index
    %53 = memref.load %arg1[%c53] : memref<155xf32, #tpu.memory_space<smem>>
    %c54 = arith.constant 54 : index
    %54 = memref.load %arg1[%c54] : memref<155xf32, #tpu.memory_space<smem>>
    %c55 = arith.constant 55 : index
    %55 = memref.load %arg1[%c55] : memref<155xf32, #tpu.memory_space<smem>>
    %c56 = arith.constant 56 : index
    %56 = memref.load %arg1[%c56] : memref<155xf32, #tpu.memory_space<smem>>
    %c57 = arith.constant 57 : index
    %57 = memref.load %arg1[%c57] : memref<155xf32, #tpu.memory_space<smem>>
    %c58 = arith.constant 58 : index
    %58 = memref.load %arg1[%c58] : memref<155xf32, #tpu.memory_space<smem>>
    %c59 = arith.constant 59 : index
    %59 = memref.load %arg1[%c59] : memref<155xf32, #tpu.memory_space<smem>>
    %c60 = arith.constant 60 : index
    %60 = memref.load %arg1[%c60] : memref<155xf32, #tpu.memory_space<smem>>
    %c61 = arith.constant 61 : index
    %61 = memref.load %arg1[%c61] : memref<155xf32, #tpu.memory_space<smem>>
    %c62 = arith.constant 62 : index
    %62 = memref.load %arg1[%c62] : memref<155xf32, #tpu.memory_space<smem>>
    %c63 = arith.constant 63 : index
    %63 = memref.load %arg1[%c63] : memref<155xf32, #tpu.memory_space<smem>>
    %c64 = arith.constant 64 : index
    %64 = memref.load %arg1[%c64] : memref<155xf32, #tpu.memory_space<smem>>
    %c65 = arith.constant 65 : index
    %65 = memref.load %arg1[%c65] : memref<155xf32, #tpu.memory_space<smem>>
    %c66 = arith.constant 66 : index
    %66 = memref.load %arg1[%c66] : memref<155xf32, #tpu.memory_space<smem>>
    %c67 = arith.constant 67 : index
    %67 = memref.load %arg1[%c67] : memref<155xf32, #tpu.memory_space<smem>>
    %c68 = arith.constant 68 : index
    %68 = memref.load %arg1[%c68] : memref<155xf32, #tpu.memory_space<smem>>
    %c69 = arith.constant 69 : index
    %69 = memref.load %arg1[%c69] : memref<155xf32, #tpu.memory_space<smem>>
    %c70 = arith.constant 70 : index
    %70 = memref.load %arg1[%c70] : memref<155xf32, #tpu.memory_space<smem>>
    %c71 = arith.constant 71 : index
    %71 = memref.load %arg1[%c71] : memref<155xf32, #tpu.memory_space<smem>>
    %c72 = arith.constant 72 : index
    %72 = memref.load %arg1[%c72] : memref<155xf32, #tpu.memory_space<smem>>
    %c73 = arith.constant 73 : index
    %73 = memref.load %arg1[%c73] : memref<155xf32, #tpu.memory_space<smem>>
    %c74 = arith.constant 74 : index
    %74 = memref.load %arg1[%c74] : memref<155xf32, #tpu.memory_space<smem>>
    %c75 = arith.constant 75 : index
    %75 = memref.load %arg1[%c75] : memref<155xf32, #tpu.memory_space<smem>>
    %c76 = arith.constant 76 : index
    %76 = memref.load %arg1[%c76] : memref<155xf32, #tpu.memory_space<smem>>
    %c77 = arith.constant 77 : index
    %77 = memref.load %arg1[%c77] : memref<155xf32, #tpu.memory_space<smem>>
    %c78 = arith.constant 78 : index
    %78 = memref.load %arg1[%c78] : memref<155xf32, #tpu.memory_space<smem>>
    %c79 = arith.constant 79 : index
    %79 = memref.load %arg1[%c79] : memref<155xf32, #tpu.memory_space<smem>>
    %c80 = arith.constant 80 : index
    %80 = memref.load %arg1[%c80] : memref<155xf32, #tpu.memory_space<smem>>
    %c81 = arith.constant 81 : index
    %81 = memref.load %arg1[%c81] : memref<155xf32, #tpu.memory_space<smem>>
    %c82 = arith.constant 82 : index
    %82 = memref.load %arg1[%c82] : memref<155xf32, #tpu.memory_space<smem>>
    %c83 = arith.constant 83 : index
    %83 = memref.load %arg1[%c83] : memref<155xf32, #tpu.memory_space<smem>>
    %c84 = arith.constant 84 : index
    %84 = memref.load %arg1[%c84] : memref<155xf32, #tpu.memory_space<smem>>
    %c85 = arith.constant 85 : index
    %85 = memref.load %arg1[%c85] : memref<155xf32, #tpu.memory_space<smem>>
    %c86 = arith.constant 86 : index
    %86 = memref.load %arg1[%c86] : memref<155xf32, #tpu.memory_space<smem>>
    %c87 = arith.constant 87 : index
    %87 = memref.load %arg1[%c87] : memref<155xf32, #tpu.memory_space<smem>>
    %c88 = arith.constant 88 : index
    %88 = memref.load %arg1[%c88] : memref<155xf32, #tpu.memory_space<smem>>
    %c89 = arith.constant 89 : index
    %89 = memref.load %arg1[%c89] : memref<155xf32, #tpu.memory_space<smem>>
    %c90 = arith.constant 90 : index
    %90 = memref.load %arg1[%c90] : memref<155xf32, #tpu.memory_space<smem>>
    %c91 = arith.constant 91 : index
    %91 = memref.load %arg1[%c91] : memref<155xf32, #tpu.memory_space<smem>>
    %c92 = arith.constant 92 : index
    %92 = memref.load %arg1[%c92] : memref<155xf32, #tpu.memory_space<smem>>
    %c93 = arith.constant 93 : index
    %93 = memref.load %arg1[%c93] : memref<155xf32, #tpu.memory_space<smem>>
    %c94 = arith.constant 94 : index
    %94 = memref.load %arg1[%c94] : memref<155xf32, #tpu.memory_space<smem>>
    %c95 = arith.constant 95 : index
    %95 = memref.load %arg1[%c95] : memref<155xf32, #tpu.memory_space<smem>>
    %c96 = arith.constant 96 : index
    %96 = memref.load %arg1[%c96] : memref<155xf32, #tpu.memory_space<smem>>
    %c97 = arith.constant 97 : index
    %97 = memref.load %arg1[%c97] : memref<155xf32, #tpu.memory_space<smem>>
    %c98 = arith.constant 98 : index
    %98 = memref.load %arg1[%c98] : memref<155xf32, #tpu.memory_space<smem>>
    %c99 = arith.constant 99 : index
    %99 = memref.load %arg1[%c99] : memref<155xf32, #tpu.memory_space<smem>>
    %c100 = arith.constant 100 : index
    %100 = memref.load %arg1[%c100] : memref<155xf32, #tpu.memory_space<smem>>
    %c101 = arith.constant 101 : index
    %101 = memref.load %arg1[%c101] : memref<155xf32, #tpu.memory_space<smem>>
    %c102 = arith.constant 102 : index
    %102 = memref.load %arg1[%c102] : memref<155xf32, #tpu.memory_space<smem>>
    %c103 = arith.constant 103 : index
    %103 = memref.load %arg1[%c103] : memref<155xf32, #tpu.memory_space<smem>>
    %c104 = arith.constant 104 : index
    %104 = memref.load %arg1[%c104] : memref<155xf32, #tpu.memory_space<smem>>
    %c105 = arith.constant 105 : index
    %105 = memref.load %arg1[%c105] : memref<155xf32, #tpu.memory_space<smem>>
    %c106 = arith.constant 106 : index
    %106 = memref.load %arg1[%c106] : memref<155xf32, #tpu.memory_space<smem>>
    %c107 = arith.constant 107 : index
    %107 = memref.load %arg1[%c107] : memref<155xf32, #tpu.memory_space<smem>>
    %c108 = arith.constant 108 : index
    %108 = memref.load %arg1[%c108] : memref<155xf32, #tpu.memory_space<smem>>
    %c109 = arith.constant 109 : index
    %109 = memref.load %arg1[%c109] : memref<155xf32, #tpu.memory_space<smem>>
    %c110 = arith.constant 110 : index
    %110 = memref.load %arg1[%c110] : memref<155xf32, #tpu.memory_space<smem>>
    %c111 = arith.constant 111 : index
    %111 = memref.load %arg1[%c111] : memref<155xf32, #tpu.memory_space<smem>>
    %c112 = arith.constant 112 : index
    %112 = memref.load %arg1[%c112] : memref<155xf32, #tpu.memory_space<smem>>
    %c113 = arith.constant 113 : index
    %113 = memref.load %arg1[%c113] : memref<155xf32, #tpu.memory_space<smem>>
    %c114 = arith.constant 114 : index
    %114 = memref.load %arg1[%c114] : memref<155xf32, #tpu.memory_space<smem>>
    %c115 = arith.constant 115 : index
    %115 = memref.load %arg1[%c115] : memref<155xf32, #tpu.memory_space<smem>>
    %c116 = arith.constant 116 : index
    %116 = memref.load %arg1[%c116] : memref<155xf32, #tpu.memory_space<smem>>
    %c117 = arith.constant 117 : index
    %117 = memref.load %arg1[%c117] : memref<155xf32, #tpu.memory_space<smem>>
    %c118 = arith.constant 118 : index
    %118 = memref.load %arg1[%c118] : memref<155xf32, #tpu.memory_space<smem>>
    %c119 = arith.constant 119 : index
    %119 = memref.load %arg1[%c119] : memref<155xf32, #tpu.memory_space<smem>>
    %c120 = arith.constant 120 : index
    %120 = memref.load %arg1[%c120] : memref<155xf32, #tpu.memory_space<smem>>
    %c121 = arith.constant 121 : index
    %121 = memref.load %arg1[%c121] : memref<155xf32, #tpu.memory_space<smem>>
    %c122 = arith.constant 122 : index
    %122 = memref.load %arg1[%c122] : memref<155xf32, #tpu.memory_space<smem>>
    %c123 = arith.constant 123 : index
    %123 = memref.load %arg1[%c123] : memref<155xf32, #tpu.memory_space<smem>>
    %c124 = arith.constant 124 : index
    %124 = memref.load %arg1[%c124] : memref<155xf32, #tpu.memory_space<smem>>
    %c125 = arith.constant 125 : index
    %125 = memref.load %arg1[%c125] : memref<155xf32, #tpu.memory_space<smem>>
    %c126 = arith.constant 126 : index
    %126 = memref.load %arg1[%c126] : memref<155xf32, #tpu.memory_space<smem>>
    %c127 = arith.constant 127 : index
    %127 = memref.load %arg1[%c127] : memref<155xf32, #tpu.memory_space<smem>>
    %c128 = arith.constant 128 : index
    %128 = memref.load %arg1[%c128] : memref<155xf32, #tpu.memory_space<smem>>
    %c129 = arith.constant 129 : index
    %129 = memref.load %arg1[%c129] : memref<155xf32, #tpu.memory_space<smem>>
    %c130 = arith.constant 130 : index
    %130 = memref.load %arg1[%c130] : memref<155xf32, #tpu.memory_space<smem>>
    %c131 = arith.constant 131 : index
    %131 = memref.load %arg1[%c131] : memref<155xf32, #tpu.memory_space<smem>>
    %c132 = arith.constant 132 : index
    %132 = memref.load %arg1[%c132] : memref<155xf32, #tpu.memory_space<smem>>
    %c133 = arith.constant 133 : index
    %133 = memref.load %arg1[%c133] : memref<155xf32, #tpu.memory_space<smem>>
    %c134 = arith.constant 134 : index
    %134 = memref.load %arg1[%c134] : memref<155xf32, #tpu.memory_space<smem>>
    %c135 = arith.constant 135 : index
    %135 = memref.load %arg1[%c135] : memref<155xf32, #tpu.memory_space<smem>>
    %c136 = arith.constant 136 : index
    %136 = memref.load %arg1[%c136] : memref<155xf32, #tpu.memory_space<smem>>
    %c137 = arith.constant 137 : index
    %137 = memref.load %arg1[%c137] : memref<155xf32, #tpu.memory_space<smem>>
    %c138 = arith.constant 138 : index
    %138 = memref.load %arg1[%c138] : memref<155xf32, #tpu.memory_space<smem>>
    %c139 = arith.constant 139 : index
    %139 = memref.load %arg1[%c139] : memref<155xf32, #tpu.memory_space<smem>>
    %c140 = arith.constant 140 : index
    %140 = memref.load %arg1[%c140] : memref<155xf32, #tpu.memory_space<smem>>
    %c141 = arith.constant 141 : index
    %141 = memref.load %arg1[%c141] : memref<155xf32, #tpu.memory_space<smem>>
    %c142 = arith.constant 142 : index
    %142 = memref.load %arg1[%c142] : memref<155xf32, #tpu.memory_space<smem>>
    %c143 = arith.constant 143 : index
    %143 = memref.load %arg1[%c143] : memref<155xf32, #tpu.memory_space<smem>>
    %c144 = arith.constant 144 : index
    %144 = memref.load %arg1[%c144] : memref<155xf32, #tpu.memory_space<smem>>
    %c145 = arith.constant 145 : index
    %145 = memref.load %arg1[%c145] : memref<155xf32, #tpu.memory_space<smem>>
    %c146 = arith.constant 146 : index
    %146 = memref.load %arg1[%c146] : memref<155xf32, #tpu.memory_space<smem>>
    %c147 = arith.constant 147 : index
    %147 = memref.load %arg1[%c147] : memref<155xf32, #tpu.memory_space<smem>>
    %c148 = arith.constant 148 : index
    %148 = memref.load %arg1[%c148] : memref<155xf32, #tpu.memory_space<smem>>
    %c149 = arith.constant 149 : index
    %149 = memref.load %arg1[%c149] : memref<155xf32, #tpu.memory_space<smem>>
    %c150 = arith.constant 150 : index
    %150 = memref.load %arg1[%c150] : memref<155xf32, #tpu.memory_space<smem>>
    %c151 = arith.constant 151 : index
    %151 = memref.load %arg1[%c151] : memref<155xf32, #tpu.memory_space<smem>>
    %c152 = arith.constant 152 : index
    %152 = memref.load %arg1[%c152] : memref<155xf32, #tpu.memory_space<smem>>
    %c153 = arith.constant 153 : index
    %153 = memref.load %arg1[%c153] : memref<155xf32, #tpu.memory_space<smem>>
    %c154 = arith.constant 154 : index
    %154 = memref.load %arg1[%c154] : memref<155xf32, #tpu.memory_space<smem>>
    %c0_0 = arith.constant 0 : index
    %c0_1 = arith.constant 0 : index
    %c0_2 = arith.constant 0 : index
    %155 = vector.load %arg2[%c0_0, %c0_1, %c0_2] : memref<3x8x128xf32, #tpu.memory_space<vmem>>, vector<1x8x128xf32>
    %156 = vector.shape_cast %155 : vector<1x8x128xf32> to vector<8x128xf32>
    %c1_3 = arith.constant 1 : index
    %c0_4 = arith.constant 0 : index
    %c0_5 = arith.constant 0 : index
    %157 = vector.load %arg2[%c1_3, %c0_4, %c0_5] : memref<3x8x128xf32, #tpu.memory_space<vmem>>, vector<1x8x128xf32>
    %158 = vector.shape_cast %157 : vector<1x8x128xf32> to vector<8x128xf32>
    %c2_6 = arith.constant 2 : index
    %c0_7 = arith.constant 0 : index
    %c0_8 = arith.constant 0 : index
    %159 = vector.load %arg2[%c2_6, %c0_7, %c0_8] : memref<3x8x128xf32, #tpu.memory_space<vmem>>, vector<1x8x128xf32>
    %160 = vector.shape_cast %159 : vector<1x8x128xf32> to vector<8x128xf32>
    %161 = vector.broadcast %0 : f32 to vector<8x128xf32>
    %162 = arith.mulf %156, %161 : vector<8x128xf32>
    %163 = vector.broadcast %18 : f32 to vector<8x128xf32>
    %164 = arith.addf %162, %163 : vector<8x128xf32>
    %165 = vector.broadcast %6 : f32 to vector<8x128xf32>
    %166 = arith.mulf %158, %165 : vector<8x128xf32>
    %167 = arith.addf %164, %166 : vector<8x128xf32>
    %168 = vector.broadcast %12 : f32 to vector<8x128xf32>
    %169 = arith.mulf %160, %168 : vector<8x128xf32>
    %170 = arith.addf %167, %169 : vector<8x128xf32>
    %cst = arith.constant 0.000000e+00 : f32
    %171 = vector.broadcast %cst : f32 to vector<8x128xf32>
    %172 = arith.maximumf %170, %171 : vector<8x128xf32>
    %173 = vector.broadcast %1 : f32 to vector<8x128xf32>
    %174 = arith.mulf %156, %173 : vector<8x128xf32>
    %175 = vector.broadcast %19 : f32 to vector<8x128xf32>
    %176 = arith.addf %174, %175 : vector<8x128xf32>
    %177 = vector.broadcast %7 : f32 to vector<8x128xf32>
    %178 = arith.mulf %158, %177 : vector<8x128xf32>
    %179 = arith.addf %176, %178 : vector<8x128xf32>
    %180 = vector.broadcast %13 : f32 to vector<8x128xf32>
    %181 = arith.mulf %160, %180 : vector<8x128xf32>
    %182 = arith.addf %179, %181 : vector<8x128xf32>
    %cst_9 = arith.constant 0.000000e+00 : f32
    %183 = vector.broadcast %cst_9 : f32 to vector<8x128xf32>
    %184 = arith.maximumf %182, %183 : vector<8x128xf32>
    %185 = vector.broadcast %2 : f32 to vector<8x128xf32>
    %186 = arith.mulf %156, %185 : vector<8x128xf32>
    %187 = vector.broadcast %20 : f32 to vector<8x128xf32>
    %188 = arith.addf %186, %187 : vector<8x128xf32>
    %189 = vector.broadcast %8 : f32 to vector<8x128xf32>
    %190 = arith.mulf %158, %189 : vector<8x128xf32>
    %191 = arith.addf %188, %190 : vector<8x128xf32>
    %192 = vector.broadcast %14 : f32 to vector<8x128xf32>
    %193 = arith.mulf %160, %192 : vector<8x128xf32>
    %194 = arith.addf %191, %193 : vector<8x128xf32>
    %cst_10 = arith.constant 0.000000e+00 : f32
    %195 = vector.broadcast %cst_10 : f32 to vector<8x128xf32>
    %196 = arith.maximumf %194, %195 : vector<8x128xf32>
    %197 = vector.broadcast %3 : f32 to vector<8x128xf32>
    %198 = arith.mulf %156, %197 : vector<8x128xf32>
    %199 = vector.broadcast %21 : f32 to vector<8x128xf32>
    %200 = arith.addf %198, %199 : vector<8x128xf32>
    %201 = vector.broadcast %9 : f32 to vector<8x128xf32>
    %202 = arith.mulf %158, %201 : vector<8x128xf32>
    %203 = arith.addf %200, %202 : vector<8x128xf32>
    %204 = vector.broadcast %15 : f32 to vector<8x128xf32>
    %205 = arith.mulf %160, %204 : vector<8x128xf32>
    %206 = arith.addf %203, %205 : vector<8x128xf32>
    %cst_11 = arith.constant 0.000000e+00 : f32
    %207 = vector.broadcast %cst_11 : f32 to vector<8x128xf32>
    %208 = arith.maximumf %206, %207 : vector<8x128xf32>
    %209 = vector.broadcast %4 : f32 to vector<8x128xf32>
    %210 = arith.mulf %156, %209 : vector<8x128xf32>
    %211 = vector.broadcast %22 : f32 to vector<8x128xf32>
    %212 = arith.addf %210, %211 : vector<8x128xf32>
    %213 = vector.broadcast %10 : f32 to vector<8x128xf32>
    %214 = arith.mulf %158, %213 : vector<8x128xf32>
    %215 = arith.addf %212, %214 : vector<8x128xf32>
    %216 = vector.broadcast %16 : f32 to vector<8x128xf32>
    %217 = arith.mulf %160, %216 : vector<8x128xf32>
    %218 = arith.addf %215, %217 : vector<8x128xf32>
    %cst_12 = arith.constant 0.000000e+00 : f32
    %219 = vector.broadcast %cst_12 : f32 to vector<8x128xf32>
    %220 = arith.maximumf %218, %219 : vector<8x128xf32>
    %221 = vector.broadcast %5 : f32 to vector<8x128xf32>
    %222 = arith.mulf %156, %221 : vector<8x128xf32>
    %223 = vector.broadcast %23 : f32 to vector<8x128xf32>
    %224 = arith.addf %222, %223 : vector<8x128xf32>
    %225 = vector.broadcast %11 : f32 to vector<8x128xf32>
    %226 = arith.mulf %158, %225 : vector<8x128xf32>
    %227 = arith.addf %224, %226 : vector<8x128xf32>
    %228 = vector.broadcast %17 : f32 to vector<8x128xf32>
    %229 = arith.mulf %160, %228 : vector<8x128xf32>
    %230 = arith.addf %227, %229 : vector<8x128xf32>
    %cst_13 = arith.constant 0.000000e+00 : f32
    %231 = vector.broadcast %cst_13 : f32 to vector<8x128xf32>
    %232 = arith.maximumf %230, %231 : vector<8x128xf32>
    %233 = vector.broadcast %24 : f32 to vector<8x128xf32>
    %234 = arith.mulf %172, %233 : vector<8x128xf32>
    %235 = vector.broadcast %72 : f32 to vector<8x128xf32>
    %236 = arith.addf %234, %235 : vector<8x128xf32>
    %237 = vector.broadcast %32 : f32 to vector<8x128xf32>
    %238 = arith.mulf %184, %237 : vector<8x128xf32>
    %239 = arith.addf %236, %238 : vector<8x128xf32>
    %240 = vector.broadcast %40 : f32 to vector<8x128xf32>
    %241 = arith.mulf %196, %240 : vector<8x128xf32>
    %242 = arith.addf %239, %241 : vector<8x128xf32>
    %243 = vector.broadcast %48 : f32 to vector<8x128xf32>
    %244 = arith.mulf %208, %243 : vector<8x128xf32>
    %245 = arith.addf %242, %244 : vector<8x128xf32>
    %246 = vector.broadcast %56 : f32 to vector<8x128xf32>
    %247 = arith.mulf %220, %246 : vector<8x128xf32>
    %248 = arith.addf %245, %247 : vector<8x128xf32>
    %249 = vector.broadcast %64 : f32 to vector<8x128xf32>
    %250 = arith.mulf %232, %249 : vector<8x128xf32>
    %251 = arith.addf %248, %250 : vector<8x128xf32>
    %cst_14 = arith.constant 0.000000e+00 : f32
    %252 = vector.broadcast %cst_14 : f32 to vector<8x128xf32>
    %253 = arith.maximumf %251, %252 : vector<8x128xf32>
    %254 = vector.broadcast %25 : f32 to vector<8x128xf32>
    %255 = arith.mulf %172, %254 : vector<8x128xf32>
    %256 = vector.broadcast %73 : f32 to vector<8x128xf32>
    %257 = arith.addf %255, %256 : vector<8x128xf32>
    %258 = vector.broadcast %33 : f32 to vector<8x128xf32>
    %259 = arith.mulf %184, %258 : vector<8x128xf32>
    %260 = arith.addf %257, %259 : vector<8x128xf32>
    %261 = vector.broadcast %41 : f32 to vector<8x128xf32>
    %262 = arith.mulf %196, %261 : vector<8x128xf32>
    %263 = arith.addf %260, %262 : vector<8x128xf32>
    %264 = vector.broadcast %49 : f32 to vector<8x128xf32>
    %265 = arith.mulf %208, %264 : vector<8x128xf32>
    %266 = arith.addf %263, %265 : vector<8x128xf32>
    %267 = vector.broadcast %57 : f32 to vector<8x128xf32>
    %268 = arith.mulf %220, %267 : vector<8x128xf32>
    %269 = arith.addf %266, %268 : vector<8x128xf32>
    %270 = vector.broadcast %65 : f32 to vector<8x128xf32>
    %271 = arith.mulf %232, %270 : vector<8x128xf32>
    %272 = arith.addf %269, %271 : vector<8x128xf32>
    %cst_15 = arith.constant 0.000000e+00 : f32
    %273 = vector.broadcast %cst_15 : f32 to vector<8x128xf32>
    %274 = arith.maximumf %272, %273 : vector<8x128xf32>
    %275 = vector.broadcast %26 : f32 to vector<8x128xf32>
    %276 = arith.mulf %172, %275 : vector<8x128xf32>
    %277 = vector.broadcast %74 : f32 to vector<8x128xf32>
    %278 = arith.addf %276, %277 : vector<8x128xf32>
    %279 = vector.broadcast %34 : f32 to vector<8x128xf32>
    %280 = arith.mulf %184, %279 : vector<8x128xf32>
    %281 = arith.addf %278, %280 : vector<8x128xf32>
    %282 = vector.broadcast %42 : f32 to vector<8x128xf32>
    %283 = arith.mulf %196, %282 : vector<8x128xf32>
    %284 = arith.addf %281, %283 : vector<8x128xf32>
    %285 = vector.broadcast %50 : f32 to vector<8x128xf32>
    %286 = arith.mulf %208, %285 : vector<8x128xf32>
    %287 = arith.addf %284, %286 : vector<8x128xf32>
    %288 = vector.broadcast %58 : f32 to vector<8x128xf32>
    %289 = arith.mulf %220, %288 : vector<8x128xf32>
    %290 = arith.addf %287, %289 : vector<8x128xf32>
    %291 = vector.broadcast %66 : f32 to vector<8x128xf32>
    %292 = arith.mulf %232, %291 : vector<8x128xf32>
    %293 = arith.addf %290, %292 : vector<8x128xf32>
    %cst_16 = arith.constant 0.000000e+00 : f32
    %294 = vector.broadcast %cst_16 : f32 to vector<8x128xf32>
    %295 = arith.maximumf %293, %294 : vector<8x128xf32>
    %296 = vector.broadcast %27 : f32 to vector<8x128xf32>
    %297 = arith.mulf %172, %296 : vector<8x128xf32>
    %298 = vector.broadcast %75 : f32 to vector<8x128xf32>
    %299 = arith.addf %297, %298 : vector<8x128xf32>
    %300 = vector.broadcast %35 : f32 to vector<8x128xf32>
    %301 = arith.mulf %184, %300 : vector<8x128xf32>
    %302 = arith.addf %299, %301 : vector<8x128xf32>
    %303 = vector.broadcast %43 : f32 to vector<8x128xf32>
    %304 = arith.mulf %196, %303 : vector<8x128xf32>
    %305 = arith.addf %302, %304 : vector<8x128xf32>
    %306 = vector.broadcast %51 : f32 to vector<8x128xf32>
    %307 = arith.mulf %208, %306 : vector<8x128xf32>
    %308 = arith.addf %305, %307 : vector<8x128xf32>
    %309 = vector.broadcast %59 : f32 to vector<8x128xf32>
    %310 = arith.mulf %220, %309 : vector<8x128xf32>
    %311 = arith.addf %308, %310 : vector<8x128xf32>
    %312 = vector.broadcast %67 : f32 to vector<8x128xf32>
    %313 = arith.mulf %232, %312 : vector<8x128xf32>
    %314 = arith.addf %311, %313 : vector<8x128xf32>
    %cst_17 = arith.constant 0.000000e+00 : f32
    %315 = vector.broadcast %cst_17 : f32 to vector<8x128xf32>
    %316 = arith.maximumf %314, %315 : vector<8x128xf32>
    %317 = vector.broadcast %28 : f32 to vector<8x128xf32>
    %318 = arith.mulf %172, %317 : vector<8x128xf32>
    %319 = vector.broadcast %76 : f32 to vector<8x128xf32>
    %320 = arith.addf %318, %319 : vector<8x128xf32>
    %321 = vector.broadcast %36 : f32 to vector<8x128xf32>
    %322 = arith.mulf %184, %321 : vector<8x128xf32>
    %323 = arith.addf %320, %322 : vector<8x128xf32>
    %324 = vector.broadcast %44 : f32 to vector<8x128xf32>
    %325 = arith.mulf %196, %324 : vector<8x128xf32>
    %326 = arith.addf %323, %325 : vector<8x128xf32>
    %327 = vector.broadcast %52 : f32 to vector<8x128xf32>
    %328 = arith.mulf %208, %327 : vector<8x128xf32>
    %329 = arith.addf %326, %328 : vector<8x128xf32>
    %330 = vector.broadcast %60 : f32 to vector<8x128xf32>
    %331 = arith.mulf %220, %330 : vector<8x128xf32>
    %332 = arith.addf %329, %331 : vector<8x128xf32>
    %333 = vector.broadcast %68 : f32 to vector<8x128xf32>
    %334 = arith.mulf %232, %333 : vector<8x128xf32>
    %335 = arith.addf %332, %334 : vector<8x128xf32>
    %cst_18 = arith.constant 0.000000e+00 : f32
    %336 = vector.broadcast %cst_18 : f32 to vector<8x128xf32>
    %337 = arith.maximumf %335, %336 : vector<8x128xf32>
    %338 = vector.broadcast %29 : f32 to vector<8x128xf32>
    %339 = arith.mulf %172, %338 : vector<8x128xf32>
    %340 = vector.broadcast %77 : f32 to vector<8x128xf32>
    %341 = arith.addf %339, %340 : vector<8x128xf32>
    %342 = vector.broadcast %37 : f32 to vector<8x128xf32>
    %343 = arith.mulf %184, %342 : vector<8x128xf32>
    %344 = arith.addf %341, %343 : vector<8x128xf32>
    %345 = vector.broadcast %45 : f32 to vector<8x128xf32>
    %346 = arith.mulf %196, %345 : vector<8x128xf32>
    %347 = arith.addf %344, %346 : vector<8x128xf32>
    %348 = vector.broadcast %53 : f32 to vector<8x128xf32>
    %349 = arith.mulf %208, %348 : vector<8x128xf32>
    %350 = arith.addf %347, %349 : vector<8x128xf32>
    %351 = vector.broadcast %61 : f32 to vector<8x128xf32>
    %352 = arith.mulf %220, %351 : vector<8x128xf32>
    %353 = arith.addf %350, %352 : vector<8x128xf32>
    %354 = vector.broadcast %69 : f32 to vector<8x128xf32>
    %355 = arith.mulf %232, %354 : vector<8x128xf32>
    %356 = arith.addf %353, %355 : vector<8x128xf32>
    %cst_19 = arith.constant 0.000000e+00 : f32
    %357 = vector.broadcast %cst_19 : f32 to vector<8x128xf32>
    %358 = arith.maximumf %356, %357 : vector<8x128xf32>
    %359 = vector.broadcast %30 : f32 to vector<8x128xf32>
    %360 = arith.mulf %172, %359 : vector<8x128xf32>
    %361 = vector.broadcast %78 : f32 to vector<8x128xf32>
    %362 = arith.addf %360, %361 : vector<8x128xf32>
    %363 = vector.broadcast %38 : f32 to vector<8x128xf32>
    %364 = arith.mulf %184, %363 : vector<8x128xf32>
    %365 = arith.addf %362, %364 : vector<8x128xf32>
    %366 = vector.broadcast %46 : f32 to vector<8x128xf32>
    %367 = arith.mulf %196, %366 : vector<8x128xf32>
    %368 = arith.addf %365, %367 : vector<8x128xf32>
    %369 = vector.broadcast %54 : f32 to vector<8x128xf32>
    %370 = arith.mulf %208, %369 : vector<8x128xf32>
    %371 = arith.addf %368, %370 : vector<8x128xf32>
    %372 = vector.broadcast %62 : f32 to vector<8x128xf32>
    %373 = arith.mulf %220, %372 : vector<8x128xf32>
    %374 = arith.addf %371, %373 : vector<8x128xf32>
    %375 = vector.broadcast %70 : f32 to vector<8x128xf32>
    %376 = arith.mulf %232, %375 : vector<8x128xf32>
    %377 = arith.addf %374, %376 : vector<8x128xf32>
    %cst_20 = arith.constant 0.000000e+00 : f32
    %378 = vector.broadcast %cst_20 : f32 to vector<8x128xf32>
    %379 = arith.maximumf %377, %378 : vector<8x128xf32>
    %380 = vector.broadcast %31 : f32 to vector<8x128xf32>
    %381 = arith.mulf %172, %380 : vector<8x128xf32>
    %382 = vector.broadcast %79 : f32 to vector<8x128xf32>
    %383 = arith.addf %381, %382 : vector<8x128xf32>
    %384 = vector.broadcast %39 : f32 to vector<8x128xf32>
    %385 = arith.mulf %184, %384 : vector<8x128xf32>
    %386 = arith.addf %383, %385 : vector<8x128xf32>
    %387 = vector.broadcast %47 : f32 to vector<8x128xf32>
    %388 = arith.mulf %196, %387 : vector<8x128xf32>
    %389 = arith.addf %386, %388 : vector<8x128xf32>
    %390 = vector.broadcast %55 : f32 to vector<8x128xf32>
    %391 = arith.mulf %208, %390 : vector<8x128xf32>
    %392 = arith.addf %389, %391 : vector<8x128xf32>
    %393 = vector.broadcast %63 : f32 to vector<8x128xf32>
    %394 = arith.mulf %220, %393 : vector<8x128xf32>
    %395 = arith.addf %392, %394 : vector<8x128xf32>
    %396 = vector.broadcast %71 : f32 to vector<8x128xf32>
    %397 = arith.mulf %232, %396 : vector<8x128xf32>
    %398 = arith.addf %395, %397 : vector<8x128xf32>
    %cst_21 = arith.constant 0.000000e+00 : f32
    %399 = vector.broadcast %cst_21 : f32 to vector<8x128xf32>
    %400 = arith.maximumf %398, %399 : vector<8x128xf32>
    %401 = vector.broadcast %80 : f32 to vector<8x128xf32>
    %402 = arith.mulf %253, %401 : vector<8x128xf32>
    %403 = vector.broadcast %128 : f32 to vector<8x128xf32>
    %404 = arith.addf %402, %403 : vector<8x128xf32>
    %405 = vector.broadcast %86 : f32 to vector<8x128xf32>
    %406 = arith.mulf %274, %405 : vector<8x128xf32>
    %407 = arith.addf %404, %406 : vector<8x128xf32>
    %408 = vector.broadcast %92 : f32 to vector<8x128xf32>
    %409 = arith.mulf %295, %408 : vector<8x128xf32>
    %410 = arith.addf %407, %409 : vector<8x128xf32>
    %411 = vector.broadcast %98 : f32 to vector<8x128xf32>
    %412 = arith.mulf %316, %411 : vector<8x128xf32>
    %413 = arith.addf %410, %412 : vector<8x128xf32>
    %414 = vector.broadcast %104 : f32 to vector<8x128xf32>
    %415 = arith.mulf %337, %414 : vector<8x128xf32>
    %416 = arith.addf %413, %415 : vector<8x128xf32>
    %417 = vector.broadcast %110 : f32 to vector<8x128xf32>
    %418 = arith.mulf %358, %417 : vector<8x128xf32>
    %419 = arith.addf %416, %418 : vector<8x128xf32>
    %420 = vector.broadcast %116 : f32 to vector<8x128xf32>
    %421 = arith.mulf %379, %420 : vector<8x128xf32>
    %422 = arith.addf %419, %421 : vector<8x128xf32>
    %423 = vector.broadcast %122 : f32 to vector<8x128xf32>
    %424 = arith.mulf %400, %423 : vector<8x128xf32>
    %425 = arith.addf %422, %424 : vector<8x128xf32>
    %cst_22 = arith.constant 0.000000e+00 : f32
    %426 = vector.broadcast %cst_22 : f32 to vector<8x128xf32>
    %427 = arith.maximumf %425, %426 : vector<8x128xf32>
    %428 = vector.broadcast %81 : f32 to vector<8x128xf32>
    %429 = arith.mulf %253, %428 : vector<8x128xf32>
    %430 = vector.broadcast %129 : f32 to vector<8x128xf32>
    %431 = arith.addf %429, %430 : vector<8x128xf32>
    %432 = vector.broadcast %87 : f32 to vector<8x128xf32>
    %433 = arith.mulf %274, %432 : vector<8x128xf32>
    %434 = arith.addf %431, %433 : vector<8x128xf32>
    %435 = vector.broadcast %93 : f32 to vector<8x128xf32>
    %436 = arith.mulf %295, %435 : vector<8x128xf32>
    %437 = arith.addf %434, %436 : vector<8x128xf32>
    %438 = vector.broadcast %99 : f32 to vector<8x128xf32>
    %439 = arith.mulf %316, %438 : vector<8x128xf32>
    %440 = arith.addf %437, %439 : vector<8x128xf32>
    %441 = vector.broadcast %105 : f32 to vector<8x128xf32>
    %442 = arith.mulf %337, %441 : vector<8x128xf32>
    %443 = arith.addf %440, %442 : vector<8x128xf32>
    %444 = vector.broadcast %111 : f32 to vector<8x128xf32>
    %445 = arith.mulf %358, %444 : vector<8x128xf32>
    %446 = arith.addf %443, %445 : vector<8x128xf32>
    %447 = vector.broadcast %117 : f32 to vector<8x128xf32>
    %448 = arith.mulf %379, %447 : vector<8x128xf32>
    %449 = arith.addf %446, %448 : vector<8x128xf32>
    %450 = vector.broadcast %123 : f32 to vector<8x128xf32>
    %451 = arith.mulf %400, %450 : vector<8x128xf32>
    %452 = arith.addf %449, %451 : vector<8x128xf32>
    %cst_23 = arith.constant 0.000000e+00 : f32
    %453 = vector.broadcast %cst_23 : f32 to vector<8x128xf32>
    %454 = arith.maximumf %452, %453 : vector<8x128xf32>
    %455 = vector.broadcast %82 : f32 to vector<8x128xf32>
    %456 = arith.mulf %253, %455 : vector<8x128xf32>
    %457 = vector.broadcast %130 : f32 to vector<8x128xf32>
    %458 = arith.addf %456, %457 : vector<8x128xf32>
    %459 = vector.broadcast %88 : f32 to vector<8x128xf32>
    %460 = arith.mulf %274, %459 : vector<8x128xf32>
    %461 = arith.addf %458, %460 : vector<8x128xf32>
    %462 = vector.broadcast %94 : f32 to vector<8x128xf32>
    %463 = arith.mulf %295, %462 : vector<8x128xf32>
    %464 = arith.addf %461, %463 : vector<8x128xf32>
    %465 = vector.broadcast %100 : f32 to vector<8x128xf32>
    %466 = arith.mulf %316, %465 : vector<8x128xf32>
    %467 = arith.addf %464, %466 : vector<8x128xf32>
    %468 = vector.broadcast %106 : f32 to vector<8x128xf32>
    %469 = arith.mulf %337, %468 : vector<8x128xf32>
    %470 = arith.addf %467, %469 : vector<8x128xf32>
    %471 = vector.broadcast %112 : f32 to vector<8x128xf32>
    %472 = arith.mulf %358, %471 : vector<8x128xf32>
    %473 = arith.addf %470, %472 : vector<8x128xf32>
    %474 = vector.broadcast %118 : f32 to vector<8x128xf32>
    %475 = arith.mulf %379, %474 : vector<8x128xf32>
    %476 = arith.addf %473, %475 : vector<8x128xf32>
    %477 = vector.broadcast %124 : f32 to vector<8x128xf32>
    %478 = arith.mulf %400, %477 : vector<8x128xf32>
    %479 = arith.addf %476, %478 : vector<8x128xf32>
    %cst_24 = arith.constant 0.000000e+00 : f32
    %480 = vector.broadcast %cst_24 : f32 to vector<8x128xf32>
    %481 = arith.maximumf %479, %480 : vector<8x128xf32>
    %482 = vector.broadcast %83 : f32 to vector<8x128xf32>
    %483 = arith.mulf %253, %482 : vector<8x128xf32>
    %484 = vector.broadcast %131 : f32 to vector<8x128xf32>
    %485 = arith.addf %483, %484 : vector<8x128xf32>
    %486 = vector.broadcast %89 : f32 to vector<8x128xf32>
    %487 = arith.mulf %274, %486 : vector<8x128xf32>
    %488 = arith.addf %485, %487 : vector<8x128xf32>
    %489 = vector.broadcast %95 : f32 to vector<8x128xf32>
    %490 = arith.mulf %295, %489 : vector<8x128xf32>
    %491 = arith.addf %488, %490 : vector<8x128xf32>
    %492 = vector.broadcast %101 : f32 to vector<8x128xf32>
    %493 = arith.mulf %316, %492 : vector<8x128xf32>
    %494 = arith.addf %491, %493 : vector<8x128xf32>
    %495 = vector.broadcast %107 : f32 to vector<8x128xf32>
    %496 = arith.mulf %337, %495 : vector<8x128xf32>
    %497 = arith.addf %494, %496 : vector<8x128xf32>
    %498 = vector.broadcast %113 : f32 to vector<8x128xf32>
    %499 = arith.mulf %358, %498 : vector<8x128xf32>
    %500 = arith.addf %497, %499 : vector<8x128xf32>
    %501 = vector.broadcast %119 : f32 to vector<8x128xf32>
    %502 = arith.mulf %379, %501 : vector<8x128xf32>
    %503 = arith.addf %500, %502 : vector<8x128xf32>
    %504 = vector.broadcast %125 : f32 to vector<8x128xf32>
    %505 = arith.mulf %400, %504 : vector<8x128xf32>
    %506 = arith.addf %503, %505 : vector<8x128xf32>
    %cst_25 = arith.constant 0.000000e+00 : f32
    %507 = vector.broadcast %cst_25 : f32 to vector<8x128xf32>
    %508 = arith.maximumf %506, %507 : vector<8x128xf32>
    %509 = vector.broadcast %84 : f32 to vector<8x128xf32>
    %510 = arith.mulf %253, %509 : vector<8x128xf32>
    %511 = vector.broadcast %132 : f32 to vector<8x128xf32>
    %512 = arith.addf %510, %511 : vector<8x128xf32>
    %513 = vector.broadcast %90 : f32 to vector<8x128xf32>
    %514 = arith.mulf %274, %513 : vector<8x128xf32>
    %515 = arith.addf %512, %514 : vector<8x128xf32>
    %516 = vector.broadcast %96 : f32 to vector<8x128xf32>
    %517 = arith.mulf %295, %516 : vector<8x128xf32>
    %518 = arith.addf %515, %517 : vector<8x128xf32>
    %519 = vector.broadcast %102 : f32 to vector<8x128xf32>
    %520 = arith.mulf %316, %519 : vector<8x128xf32>
    %521 = arith.addf %518, %520 : vector<8x128xf32>
    %522 = vector.broadcast %108 : f32 to vector<8x128xf32>
    %523 = arith.mulf %337, %522 : vector<8x128xf32>
    %524 = arith.addf %521, %523 : vector<8x128xf32>
    %525 = vector.broadcast %114 : f32 to vector<8x128xf32>
    %526 = arith.mulf %358, %525 : vector<8x128xf32>
    %527 = arith.addf %524, %526 : vector<8x128xf32>
    %528 = vector.broadcast %120 : f32 to vector<8x128xf32>
    %529 = arith.mulf %379, %528 : vector<8x128xf32>
    %530 = arith.addf %527, %529 : vector<8x128xf32>
    %531 = vector.broadcast %126 : f32 to vector<8x128xf32>
    %532 = arith.mulf %400, %531 : vector<8x128xf32>
    %533 = arith.addf %530, %532 : vector<8x128xf32>
    %cst_26 = arith.constant 0.000000e+00 : f32
    %534 = vector.broadcast %cst_26 : f32 to vector<8x128xf32>
    %535 = arith.maximumf %533, %534 : vector<8x128xf32>
    %536 = vector.broadcast %85 : f32 to vector<8x128xf32>
    %537 = arith.mulf %253, %536 : vector<8x128xf32>
    %538 = vector.broadcast %133 : f32 to vector<8x128xf32>
    %539 = arith.addf %537, %538 : vector<8x128xf32>
    %540 = vector.broadcast %91 : f32 to vector<8x128xf32>
    %541 = arith.mulf %274, %540 : vector<8x128xf32>
    %542 = arith.addf %539, %541 : vector<8x128xf32>
    %543 = vector.broadcast %97 : f32 to vector<8x128xf32>
    %544 = arith.mulf %295, %543 : vector<8x128xf32>
    %545 = arith.addf %542, %544 : vector<8x128xf32>
    %546 = vector.broadcast %103 : f32 to vector<8x128xf32>
    %547 = arith.mulf %316, %546 : vector<8x128xf32>
    %548 = arith.addf %545, %547 : vector<8x128xf32>
    %549 = vector.broadcast %109 : f32 to vector<8x128xf32>
    %550 = arith.mulf %337, %549 : vector<8x128xf32>
    %551 = arith.addf %548, %550 : vector<8x128xf32>
    %552 = vector.broadcast %115 : f32 to vector<8x128xf32>
    %553 = arith.mulf %358, %552 : vector<8x128xf32>
    %554 = arith.addf %551, %553 : vector<8x128xf32>
    %555 = vector.broadcast %121 : f32 to vector<8x128xf32>
    %556 = arith.mulf %379, %555 : vector<8x128xf32>
    %557 = arith.addf %554, %556 : vector<8x128xf32>
    %558 = vector.broadcast %127 : f32 to vector<8x128xf32>
    %559 = arith.mulf %400, %558 : vector<8x128xf32>
    %560 = arith.addf %557, %559 : vector<8x128xf32>
    %cst_27 = arith.constant 0.000000e+00 : f32
    %561 = vector.broadcast %cst_27 : f32 to vector<8x128xf32>
    %562 = arith.maximumf %560, %561 : vector<8x128xf32>
    %563 = vector.broadcast %134 : f32 to vector<8x128xf32>
    %564 = arith.mulf %427, %563 : vector<8x128xf32>
    %565 = vector.broadcast %152 : f32 to vector<8x128xf32>
    %566 = arith.addf %564, %565 : vector<8x128xf32>
    %567 = vector.broadcast %137 : f32 to vector<8x128xf32>
    %568 = arith.mulf %454, %567 : vector<8x128xf32>
    %569 = arith.addf %566, %568 : vector<8x128xf32>
    %570 = vector.broadcast %140 : f32 to vector<8x128xf32>
    %571 = arith.mulf %481, %570 : vector<8x128xf32>
    %572 = arith.addf %569, %571 : vector<8x128xf32>
    %573 = vector.broadcast %143 : f32 to vector<8x128xf32>
    %574 = arith.mulf %508, %573 : vector<8x128xf32>
    %575 = arith.addf %572, %574 : vector<8x128xf32>
    %576 = vector.broadcast %146 : f32 to vector<8x128xf32>
    %577 = arith.mulf %535, %576 : vector<8x128xf32>
    %578 = arith.addf %575, %577 : vector<8x128xf32>
    %579 = vector.broadcast %149 : f32 to vector<8x128xf32>
    %580 = arith.mulf %562, %579 : vector<8x128xf32>
    %581 = arith.addf %578, %580 : vector<8x128xf32>
    %582 = vector.broadcast %135 : f32 to vector<8x128xf32>
    %583 = arith.mulf %427, %582 : vector<8x128xf32>
    %584 = vector.broadcast %153 : f32 to vector<8x128xf32>
    %585 = arith.addf %583, %584 : vector<8x128xf32>
    %586 = vector.broadcast %138 : f32 to vector<8x128xf32>
    %587 = arith.mulf %454, %586 : vector<8x128xf32>
    %588 = arith.addf %585, %587 : vector<8x128xf32>
    %589 = vector.broadcast %141 : f32 to vector<8x128xf32>
    %590 = arith.mulf %481, %589 : vector<8x128xf32>
    %591 = arith.addf %588, %590 : vector<8x128xf32>
    %592 = vector.broadcast %144 : f32 to vector<8x128xf32>
    %593 = arith.mulf %508, %592 : vector<8x128xf32>
    %594 = arith.addf %591, %593 : vector<8x128xf32>
    %595 = vector.broadcast %147 : f32 to vector<8x128xf32>
    %596 = arith.mulf %535, %595 : vector<8x128xf32>
    %597 = arith.addf %594, %596 : vector<8x128xf32>
    %598 = vector.broadcast %150 : f32 to vector<8x128xf32>
    %599 = arith.mulf %562, %598 : vector<8x128xf32>
    %600 = arith.addf %597, %599 : vector<8x128xf32>
    %601 = vector.broadcast %136 : f32 to vector<8x128xf32>
    %602 = arith.mulf %427, %601 : vector<8x128xf32>
    %603 = vector.broadcast %154 : f32 to vector<8x128xf32>
    %604 = arith.addf %602, %603 : vector<8x128xf32>
    %605 = vector.broadcast %139 : f32 to vector<8x128xf32>
    %606 = arith.mulf %454, %605 : vector<8x128xf32>
    %607 = arith.addf %604, %606 : vector<8x128xf32>
    %608 = vector.broadcast %142 : f32 to vector<8x128xf32>
    %609 = arith.mulf %481, %608 : vector<8x128xf32>
    %610 = arith.addf %607, %609 : vector<8x128xf32>
    %611 = vector.broadcast %145 : f32 to vector<8x128xf32>
    %612 = arith.mulf %508, %611 : vector<8x128xf32>
    %613 = arith.addf %610, %612 : vector<8x128xf32>
    %614 = vector.broadcast %148 : f32 to vector<8x128xf32>
    %615 = arith.mulf %535, %614 : vector<8x128xf32>
    %616 = arith.addf %613, %615 : vector<8x128xf32>
    %617 = vector.broadcast %151 : f32 to vector<8x128xf32>
    %618 = arith.mulf %562, %617 : vector<8x128xf32>
    %619 = arith.addf %616, %618 : vector<8x128xf32>
    %c0_28 = arith.constant 0 : index
    %c0_29 = arith.constant 0 : index
    %c0_30 = arith.constant 0 : index
    %620 = vector.load %arg3[%c0_28, %c0_29, %c0_30] : memref<3x8x128xf32, #tpu.memory_space<vmem>>, vector<1x8x128xf32>
    %621 = vector.shape_cast %620 : vector<1x8x128xf32> to vector<8x128xf32>
    %622 = vector.shape_cast %581 : vector<8x128xf32> to vector<1x8x128xf32>
    tpu.vector_store %arg3[%c0_28, %c0_29, %c0_30], %622 {strides = array<i32>} : memref<3x8x128xf32, #tpu.memory_space<vmem>>, vector<1x8x128xf32>,
    %c1_31 = arith.constant 1 : index
    %c0_32 = arith.constant 0 : index
    %c0_33 = arith.constant 0 : index
    %623 = vector.load %arg3[%c1_31, %c0_32, %c0_33] : memref<3x8x128xf32, #tpu.memory_space<vmem>>, vector<1x8x128xf32>
    %624 = vector.shape_cast %623 : vector<1x8x128xf32> to vector<8x128xf32>
    %625 = vector.shape_cast %600 : vector<8x128xf32> to vector<1x8x128xf32>
    tpu.vector_store %arg3[%c1_31, %c0_32, %c0_33], %625 {strides = array<i32>} : memref<3x8x128xf32, #tpu.memory_space<vmem>>, vector<1x8x128xf32>,
    %c2_34 = arith.constant 2 : index
    %c0_35 = arith.constant 0 : index
    %c0_36 = arith.constant 0 : index
    %626 = vector.load %arg3[%c2_34, %c0_35, %c0_36] : memref<3x8x128xf32, #tpu.memory_space<vmem>>, vector<1x8x128xf32>
    %627 = vector.shape_cast %626 : vector<1x8x128xf32> to vector<8x128xf32>
    %628 = vector.shape_cast %619 : vector<8x128xf32> to vector<1x8x128xf32>
    tpu.vector_store %arg3[%c2_34, %c0_35, %c0_36], %628 {strides = array<i32>} : memref<3x8x128xf32, #tpu.memory_space<vmem>>, vector<1x8x128xf32>,
    return
  }
  func.func @transform_0(%arg0: i32) -> i32 {
    %c0_i32 = arith.constant 0 : i32
    %c0_i32_0 = arith.constant 0 : i32
    return %c0_i32 : i32
  }
  func.func @transform_1(%arg0: i32) -> (i32, i32, i32) {
    %c0_i32 = arith.constant 0 : i32
    %c0_i32_0 = arith.constant 0 : i32
    %c0_i32_1 = arith.constant 0 : i32
    return %c0_i32, %arg0, %c0_i32_0 : i32, i32, i32
  }
  func.func @transform_2(%arg0: i32) -> (i32, i32, i32) {
    %c0_i32 = arith.constant 0 : i32
    %c0_i32_0 = arith.constant 0 : i32
    %c0_i32_1 = arith.constant 0 : i32
    return %c0_i32, %arg0, %c0_i32_0 : i32, i32, i32
  }
}

</mosaic_0001>

<bundles_post_ra>
// kernel: tpu_custom_call.1
= control target key start
LH: loop header
LB: loop body
LE: loop exit
PB: predicated region body
PF: predicated region fallthrough
CT: control target
= control target key end

     0   :  { %s2179_s0 = inlined_call_operand.hbm [shape: f32[155], index: 0, kind: input, shape index: {}]   ;;  %s2180_s1 = inlined_call_operand.hbm [shape: f32[3,16,128], index: 1, kind: input, shape index: {}]   ;;  %s2181_s2 = inlined_call_operand.hbm [shape: f32[3,16,128], index: 2, kind: output, shape index: {}]  }
   0x1   :  { %2200 = sst [smem:[#allocation45_spill]] %s2179_s0 }
   0x2   :  { %2201 = sst [smem:[#allocation46_spill]] %s2180_s1 }
   0x3   :  { %2202 = sst [smem:[#allocation47_spill]] %s2181_s2 }
   0x4   :  { %7 = vsyncpa [#allocation5], 0 }
   0x5   :  { %8 = vsyncpa [#allocation3], 0 }
   0x6   :  { %10 = vsyncpa [#allocation3 + $0x1], 0 }
   0x7   :  { %11 = vsyncpa [#allocation4], 0 }
   0x8   :  { %13 = vsyncpa [#allocation4 + $0x1], 0  ;;  %s1241_s9 = smov 0   ;;  %s1243_s10 = smov 0  }
   0x9   :  { %s1245_s11 = smov 0   ;;  %s1247_s12 = smov 0  }
   0xa LB: > { %2203 = sst [smem:[#allocation11_spill]] %s1203_s9  ;;  %s1262_s13 = sadd.s32 4294967295, %s1215_s12   ;;  %s1215_s12 = sphi %s1247_s12, %s2311_s12   ;;  %s1211_s11 = sphi %s1245_s11, %s2314_s11   ;;  %s1207_s10 = sphi %s1243_s10, %s2313_s10   ;;  %s1203_s9 = sphi %s1241_s9, %s2312_s9  }
   0xb   : > { %2204 = sst [smem:[#allocation12_spill]] %s1207_s10  ;;  %s875_s14 = sadd.s32 4294967294, %s1215_s12  }
   0xc   : > { %2205 = sst [smem:[#allocation13_spill]] %s1211_s11  ;;  %s1266_s15 = sadd.s32 1, %s1215_s12  }
   0xd   : > { %2206 = sst [smem:[#allocation14_spill]] %s1215_s12  ;;  %s47_s16 = sadd.s32 1, %s1211_s11 }
   0xe   : > { %2207 = sst [smem:[#allocation15_spill]] %s1262_s13  ;;  %s44_s17 = ssub.s32 %s1215_s12, %s1266_s15 }
   0xf   : > { %2208 = sst [smem:[#allocation16_spill]] %s1266_s15  ;;  %p54_p0 = scmp.ne.s32.totalorder %s1211_s11, %s1207_s10 }
  0x10   : > { %p45_p1 = scmp.eq.s32.totalorder %s44_s17, 0  ;;  %p55_p2 = scmp.eq.s32.totalorder %s1215_s12, 0 }
  0x11   : > { %p60_p3 = scmp.ne.s32.totalorder %s1207_s10, %s1203_s9  ;;  %p2182_p4 = scmp.eq.s32.totalorder %s1262_s13, 0 }
  0x12   : > { %s1278_s18 = scalar_select %p45_p1, %s1211_s11, %s47_s16  }
  0x13   : > { %p1280_p5 = por %p55_p2, %p54_p0  ;;  %p1286_p6 = por %p2182_p4, %p60_p3 }
  0x14   : > { %2209 = sst [smem:[#allocation17_spill]] %s1278_s18  ;;  %p84_p7 = scmp.eq.s32.totalorder %s1262_s13, 1 }
  0x15   : > { %s2211_s20 = scalar_select %p1286_p6, 1, 0 }
  0x16   : > { %p90_p8 = scmp.eq.s32.totalorder %s875_s14, 1  ;;  %p876_p9 = scmp.ge.s32.totalorder %s1215_s12, 1 }
  0x17   : > { %p97_p10 = scmp.lt.s32.totalorder %s1215_s12, 3  ;;  %p1293_p11 = por %p84_p7, %p54_p0 }
  0x18   : > { %p1297_p12 = por %p90_p8, %p60_p3  ;;  %p1066_p4 = scmp.lt.s32.totalorder %s1215_s12, 2 }
  0x19   : > { %s2212_s21 = scalar_select %p1293_p11, 1, 0 }
  0x1a   : > { %s2214_s22 = scalar_select %p1297_p12, 1, 0 }
  0x1b   : > { %2213 = sst [smem:[#allocation18_spill]] %s2212_s21  ;;  %p1301_p13 = pnand %p876_p9, %p97_p10 }
  0x1c   : > { %2215 = sst [smem:[#allocation19_spill]] %s2214_s22  ;;  %s119_s24 = sand.u32 1, %s1211_s11  }
  0x1d   : > { %s2216_s23 = scalar_select %p1301_p13, 1, 0 }
  0x1e   : > { %p1053_p2 = pneg %p1301_p13  ;;  %s879_s25 = sshll.u32 %s1215_s12, 7 }
  0x1f   : > { %p2217_p6 = scmp.eq.s32.totalorder %s1262_s13, 0  ;;  %p1315_p7 = pnand %p1066_p4, %p1280_p5 }
  0x20   : > { %s1043_s27 = smul.u32 24, %s119_s24  ;;  %s1217_s28 = smov [#allocation2]  }
  0x21   : > { %p1054_p0 = pnand %p1053_p2, %p2217_p6  ;;  %s2219_s0 = sld [smem:[#allocation45_spill]] }
  0x22   : > { %s2220_s1 = sld [smem:[#allocation46_spill]]  ;;  %s123_s6 = scalar_lea.vmem [#allocation6], %s1043_s27 }
  0x23   : > { %s129_s7 = sshll.u32 %s123_s6, 4  ;;  %s1329_s8 = scalar_lea.sflag [#allocation3], %s119_s24  ;;  %s1327_s7 = int_to_ptr.vmem [resolvable:$true] %s129_s7 }
  0x24   : > { %p1121_p4 = pneg %p1315_p7 }
  0x27   : > { %1056 = dma.hbm_to_smem (!%p1054_p0), %s2219_s0, 32, %s1217_s28, [#allocation5]  }
  0x28   : > { %s1325_s5 = scalar_lea.hbm %s2220_s1, %s879_s25  ;;  %s1124_s19 = scalar_lea.hbm %s2220_s1, 768 }
  0x29   : > { %s1119_s14 = scalar_lea.hbm %s1325_s5, 384  ;;  %p1125_p8 = scmp.lt.s32.totalorder %s1325_s5, %s2220_s1 }
  0x2a   : > { %p1120_p3 = scmp.ne.s32.totalorder %s1325_s5, %s1119_s14  ;;  %p1126_p9 = scmp.lt.s32.totalorder %s1124_s19, %s1119_s14 }
  0x2c   : > { %p1122_p5 = pnand %p1121_p4, %p1120_p3  ;;  %p1127_p10 = por %p1126_p9, %p1125_p8 }
  0x2e   : > { %p1123_p6 = pneg %p1122_p5 }
  0x30   : > { %p1128_p2 = pnand %p1127_p10, %p1123_p6 }
  0x32   : > { %1131 = shalt.err (!%p1128_p2)
}
  0x33   : > { %s1132_s24 = scalar_lea.vmem %s1327_s7, 384  ;;  %s1218_s27 = smov [#allocation6]  }
  0x34   : > { %p1133_p0 = scmp.ne.s32.totalorder %s1327_s7, %s1132_s24  ;;  %s1137_s29 = sshll.u32 %s1218_s27, 4  ;;  %s1138_s29 = int_to_ptr.vmem [resolvable:$false] %s1137_s29 }
  0x35   : > { %s1139_s30 = scalar_lea.vmem %s1138_s29, 768  ;;  %p1140_p5 = scmp.lt.s32.totalorder %s1327_s7, %s1138_s29 }
  0x36   : > { %p1135_p1 = pnand %p1133_p0, %p1121_p4  ;;  %p1141_p12 = scmp.lt.s32.totalorder %s1139_s30, %s1132_s24 }
  0x38   : > { %p1136_p3 = pneg %p1135_p1  ;;  %p1142_p11 = por %p1141_p12, %p1140_p5 }
  0x3a   : > { %p1143_p13 = pnand %p1142_p11, %p1136_p3 }
  0x3c   : > { %1146 = shalt.err (!%p1143_p13)
}
  0x3d   : > { %s1219_s3 = smov 256   ;;  %s1220_s4 = smov 128  }
  0x3e   : > { %s1221_s6 = smov 8   ;;  %p2221_p1 = scmp.ne.s32.totalorder %s2216_s23, 0 }
  0x3f   : > { %1060 = dma.hbm_to_vmem [thread:$0]  (!%p1315_p7), %s1325_s5, 384, %s1327_s7, %s1329_s8, %s1219_s3, %s1220_s4, %s1221_s6  }
  0x40   : > { %141 = sbr.rel (%p2221_p1) target bundleno = 342 (0x156), region = 28 }
  0x45   : > { %p2222_p4 = scmp.eq.s32.totalorder %s1262_s13, 0 }
  0x47   : > { %1190 = dma.done.wait (%p2222_p4), [#allocation5], 32   ;;  %p2223_p6 = pmov %p2222_p4 }
  0x48   : > { %s1357_s14 = sand.u32 1, %s1207_s10   ;;  %p2225_p11 = scmp.ne.s32.totalorder %s2211_s20, 0 }
  0x49   : > { %1192 = vsyncadd (%p2223_p6), [#allocation5], 4294967264  ;;  %2224 = sst [smem:[#allocation20_spill]] %s1357_s14  ;;  %s2186_s16 = smul.u32 24, %s1357_s14 }
  0x4a   : > { %s148_s17 = scalar_lea.sflag [#allocation3], %s1357_s14 }
  0x4b   : > { %s1363_s26 = scalar_lea.vmem [#allocation6], %s2186_s16 }
  0x4c   : > { %1194 = dma.done.wait (%p2225_p11), %s148_s17, 384  }
  0x4d   : > { %1196 = vsyncadd (%p2225_p11), %s148_s17, 4294966912 }
  0x4e   : > { %156 = sfence }
  0x4f   : > { %s1369_s23 = sld [smem:[#allocation2]]  ;;  %v328_v0 = vld [vmem:[%s1363_s26] sm:$0xff]  ;;  %v1036_v5 = vld [vmem:[%s1363_s26 + $0x8] sm:$0xff]  ;;  %v1037_v19 = vld [vmem:[%s1363_s26 + $0x10] sm:$0xff] }
  0x50   : > { %s1371_s5 = sld [smem:[#allocation2 + $0x1]] }
  0x51   : > { %s1373_s7 = sld [smem:[#allocation2 + $0x2]] }
  0x52   : > { %s1375_s8 = sld [smem:[#allocation2 + $0x3]] }
  0x53   : > { %s1377_s19 = sld [smem:[#allocation2 + $0x4]] }
  0x54   : > { %s1379_s25 = sld [smem:[#allocation2 + $0x5]] }
  0x55   : > { %s1381_s28 = sld [smem:[#allocation2 + $0x6]]  ;;  %v333_v1 = vstv %s1369_s23 }
  0x56   : > { %s1383_s24 = sld [smem:[#allocation2 + $0x7]]  ;;  %v334_v2 = vmul.f32 %v333_v1, %v328_v0  ;;  %v344_v3 = vstv %s1371_s5 }
  0x57   : > { %s1385_s27 = sld [smem:[#allocation2 + $0x8]]  ;;  %v355_v4 = vstv %s1373_s7  ;;  %v345_v11 = vmul.f32 %v344_v3, %v328_v0 }
  0x58   : > { %s1387_s20 = sld [smem:[#allocation2 + $0x9]]  ;;  %v366_v8 = vstv %s1375_s8  ;;  %v356_v13 = vmul.f32 %v355_v4, %v328_v0 }
  0x59   : > { %s1389_s29 = sld [smem:[#allocation2 + $0xa]]  ;;  %v377_v9 = vstv %s1377_s19  ;;  %v367_v18 = vmul.f32 %v366_v8, %v328_v0 }
  0x5a   : > { %s1391_s30 = sld [smem:[#allocation2 + $0xb]]  ;;  %v388_v10 = vstv %s1379_s25  ;;  %v378_v22 = vmul.f32 %v377_v9, %v328_v0 }
  0x5b   : > { %s1393_s3 = sld [smem:[#allocation2 + $0xc]]  ;;  %v337_v7 = vstv %s1381_s28  ;;  %v389_v23 = vmul.f32 %v388_v10, %v328_v0 }
  0x5c   : > { %s1395_s4 = sld [smem:[#allocation2 + $0xd]]  ;;  %v348_v12 = vstv %s1383_s24  ;;  %v338_v16 = vmul.f32 %v1036_v5, %v337_v7 }
  0x5d   : > { %s1397_s6 = sld [smem:[#allocation2 + $0xe]]  ;;  %v359_v14 = vstv %s1385_s27  ;;  %v349_v24 = vmul.f32 %v1036_v5, %v348_v12 }
  0x5e   : > { %s1399_s17 = sld [smem:[#allocation2 + $0xf]]  ;;  %v360_v25 = vmul.f32 %v1036_v5, %v359_v14  ;;  %v370_v27 = vstv %s1387_s20 }
  0x5f   : > { %s1401_s16 = sld [smem:[#allocation2 + $0x10]]  ;;  %v381_v30 = vstv %s1389_s29  ;;  %v371_v38 = vmul.f32 %v1036_v5, %v370_v27 }
  0x60   : > { %s1403_s0 = sld [smem:[#allocation2 + $0x11]]  ;;  %v392_v31 = vstv %s1391_s30  ;;  %v382_v42 = vmul.f32 %v1036_v5, %v381_v30 }
  0x61   : > { %s1405_s1 = sld [smem:[#allocation2 + $0x12]]  ;;  %v340_v20 = vstv %s1393_s3  ;;  %v393_v46 = vmul.f32 %v1036_v5, %v392_v31 }
  0x62   : > { %s1407_s18 = sld [smem:[#allocation2 + $0x13]]  ;;  %v341_v33 = vmul.f32 %v1037_v19, %v340_v20  ;;  %v351_v34 = vstv %s1395_s4 }
  0x63   : > { %2226 = sst [smem:[#allocation21_spill]] %s1397_s6  ;;  %v352_v44 = vmul.f32 %v1037_v19, %v351_v34 }
  0x64   : > { %2227 = sst [smem:[#allocation22_spill]] %s1399_s17 }
  0x65   : > { %2228 = sst [smem:[#allocation23_spill]] %s1401_s16 }
  0x66   : > { %2229 = sst [smem:[#allocation24_spill]] %s1403_s0 }
  0x67   : > { %s1409_s11 = sld [smem:[#allocation2 + $0x14]]  ;;  %v335_v6 = vstv %s1405_s1 }
  0x68   : > { %s1411_s10 = sld [smem:[#allocation2 + $0x15]]  ;;  %v336_v15 = vadd.f32 %v335_v6, %v334_v2  ;;  %v346_v17 = vstv %s1407_s18 }
  0x69   : > { %s1413_s15 = sld [smem:[#allocation2 + $0x16]]  ;;  %v347_v28 = vadd.f32 %v346_v17, %v345_v11 }
  0x6a   : > { %s1415_s12 = sld [smem:[#allocation2 + $0x17]]  ;;  %v339_v32 = vadd.f32 %v338_v16, %v336_v15 }
  0x6b   : > { %s1417_s22 = sld [smem:[#allocation2 + $0x18]]  ;;  %v350_v43 = vadd.f32 %v349_v24, %v347_v28 }
  0x6c   : > { %s1419_s9 = sld [smem:[#allocation2 + $0x19]]  ;;  %v342_v47 = vadd.f32 %v341_v33, %v339_v32 }
  0x6d   : > { %s1421_s2 = sld [smem:[#allocation2 + $0x1a]]  ;;  %v357_v21 = vstv %s1409_s11  ;;  %v353_v56 = vadd.f32 %v352_v44, %v350_v43 }
  0x6e   : > { %s1423_s21 = sld [smem:[#allocation2 + $0x1b]]  ;;  %v368_v26 = vstv %s1411_s10  ;;  %v358_v35 = vadd.f32 %v357_v21, %v356_v13  ;;  %v343_v57 = vmax.f32 %v342_v47, 0.0 }
  0x6f   : > { %s1425_s14 = sld [smem:[#allocation2 + $0x1c]]  ;;  %v379_v29 = vstv %s1413_s15  ;;  %v369_v37 = vadd.f32 %v368_v26, %v367_v18  ;;  %v354_v2 = vmax.f32 %v353_v56, 0.0 }
  0x70   : > { %s1427_s13 = sld [smem:[#allocation2 + $0x1d]]  ;;  %v390_v39 = vstv %s1415_s12  ;;  %v380_v41 = vadd.f32 %v379_v29, %v378_v22  ;;  %v361_v48 = vadd.f32 %v360_v25, %v358_v35 }
  0x71   : > { %2230 = sst [smem:[#allocation25_spill]] %s1417_s22  ;;  %v391_v50 = vadd.f32 %v390_v39, %v389_v23  ;;  %v372_v51 = vadd.f32 %v371_v38, %v369_v37 }
  0x72   : > { %2231 = sst [smem:[#allocation26_spill]] %s1419_s9  ;;  %v383_v54 = vadd.f32 %v382_v42, %v380_v41 }
  0x73   : > { %2232 = sst [smem:[#allocation27_spill]] %s1421_s2  ;;  %v394_v59 = vadd.f32 %v393_v46, %v391_v50 }
  0x74   : > { %2233 = sst [smem:[#allocation28_spill]] %s1423_s21 }
  0x75   : > { %2234 = sst [smem:[#allocation29_spill]] %s1425_s14 }
  0x76   : > { %2235 = sst [smem:[#allocation30_spill]] %s1427_s13 }
  0x77   : > { %s1429_s0 = sld [smem:[#allocation2 + $0x1e]] }
  0x78   : > { %s1431_s16 = sld [smem:[#allocation2 + $0x1f]] }
  0x79   : > { %s1433_s17 = sld [smem:[#allocation2 + $0x20]] }
  0x7a   : > { %s1435_s6 = sld [smem:[#allocation2 + $0x21]] }
  0x7b   : > { %s1437_s22 = sld [smem:[#allocation2 + $0x22]] }
  0x7c   : > { %s1439_s9 = sld [smem:[#allocation2 + $0x23]] }
  0x7d   : > { %s1441_s2 = sld [smem:[#allocation2 + $0x24]]  ;;  %v519_v13 = vstv %s1429_s0 }
  0x7e   : > { %2236 = sst [smem:[#allocation31_spill]] %s1431_s16  ;;  %v1584_v25 = vmul.f32 %v519_v13, %v343_v57 }
  0x7f   : > { %2237 = sst [smem:[#allocation32_spill]] %s1433_s17 }
  0x80   : > { %2238 = sst [smem:[#allocation33_spill]] %s1435_s6 }
  0x81   : > { %2239 = sst [smem:[#allocation34_spill]] %s1437_s22 }
  0x82   : > { %2240 = sst [smem:[#allocation35_spill]] %s1439_s9 }
  0x83   : > { %s1443_s21 = sld [smem:[#allocation2 + $0x25]]  ;;  %v483_v22 = vstv %s1441_s2 }
  0x84   : > { %s1445_s14 = sld [smem:[#allocation2 + $0x26]]  ;;  %v1600_v33 = vmul.f32 %v483_v22, %v354_v2 }
  0x85   : > { %s1447_s13 = sld [smem:[#allocation2 + $0x27]] }
  0x86   : > { %s1449_s16 = sld [smem:[#allocation2 + $0x28]] }
  0x87   : > { %s1451_s17 = sld [smem:[#allocation2 + $0x29]] }
  0x88   : > { %s1453_s6 = sld [smem:[#allocation2 + $0x2a]] }
  0x89   : > { %2241 = sst [smem:[#allocation36_spill]] %s1443_s21 }
  0x8a   : > { %2242 = sst [smem:[#allocation37_spill]] %s1445_s14 }
  0x8b   : > { %2243 = sst [smem:[#allocation38_spill]] %s1447_s13 }
  0x8c   : > { %2244 = sst [smem:[#allocation39_spill]] %s1449_s16 }
  0x8d   : > { %s1455_s22 = sld [smem:[#allocation2 + $0x2b]]  ;;  %v426_v35 = vstv %s1451_s17 }
  0x8e   : > { %2245 = sst [smem:[#allocation40_spill]] %s1453_s6 }
  0x8f   : > { %s1457_s9 = sld [smem:[#allocation2 + $0x2c]] }
  0x90   : > { %s1459_s21 = sld [smem:[#allocation2 + $0x2d]] }
  0x91   : > { %s1461_s14 = sld [smem:[#allocation2 + $0x2e]] }
  0x92   : > { %s1463_s13 = sld [smem:[#allocation2 + $0x2f]] }
  0x93   : > { %2246 = sst [smem:[#allocation41_spill]] %s1455_s22 }
  0x94   : > { %s1465_s16 = sld [smem:[#allocation2 + $0x30]] }
  0x95   : > { %2247 = sst [smem:[#allocation42_spill]] %s1457_s9 }
  0x96   : > { %s1469_s6 = sld [smem:[#allocation2 + $0x31]] }
  0x97   : > { %2248 = sst [smem:[#allocation43_spill]] %s1461_s14 }
  0x98   : > { %s1471_s22 = sld [smem:[#allocation2 + $0x32]]  ;;  %v546_v46 = vstv %s1463_s13 }
  0x99   : > { %s1473_s9 = sld [smem:[#allocation2 + $0x33]] }
  0x9a   : > { %s1477_s14 = sld [smem:[#allocation2 + $0x34]]  ;;  %v409_v47 = vstv %s1465_s16 }
  0x9b   : > { %s1483_s23 = sld [smem:[#allocation2 + $0x35]] }
  0x9c   : > { %s1491_s5 = sld [smem:[#allocation2 + $0x37]]  ;;  %v429_v56 = vstv %s1469_s6 }
  0x9d   : > { %s1494_s1 = sld [smem:[#allocation2 + $0x38]] }
  0x9e   : > { %2249 = sst [smem:[#allocation44_spill]] %s1471_s22 }
  0x9f   : > { %s1487_s22 = sld [smem:[#allocation2 + $0x36]] }
  0xa0   : > { %s1499_s7 = sld [smem:[#allocation2 + $0x39]] }
  0xa1   : > { %s2250_s8 = sld [smem:[#allocation21_spill]] }
  0xa2   : > { %s1503_s18 = sld [smem:[#allocation2 + $0x3a]]  ;;  %v549_v22 = vstv %s1491_s5 }
  0xa3   : > { %s2251_s19 = sld [smem:[#allocation22_spill]] }
  0xa4   : > { %s1508_s26 = sld [smem:[#allocation2 + $0x3b]] }
  0xa5   : > { %s2252_s11 = sld [smem:[#allocation23_spill]] }
  0xa6   : > { %s1511_s25 = sld [smem:[#allocation2 + $0x3c]] }
  0xa7   : > { %v362_v36 = vstv %s2250_s8  ;;  %s1515_s10 = sld [smem:[#allocation2 + $0x3d]] }
  0xa8   : > { %s2254_s28 = sld [smem:[#allocation24_spill]]  ;;  %v363_v49 = vmul.f32 %v1037_v19, %v362_v36 }
  0xa9   : > { %v373_v40 = vstv %s2251_s19  ;;  %s1518_s15 = sld [smem:[#allocation2 + $0x3e]] }
  0xaa   : > { %s1521_s24 = sld [smem:[#allocation2 + $0x3f]]  ;;  %v374_v52 = vmul.f32 %v1037_v19, %v373_v40  ;;  %v364_v58 = vadd.f32 %v363_v49, %v361_v48  ;;  %v506_v40 = vstv %s1459_s21 }
  0xab   : > { %v384_v45 = vstv %s2252_s11  ;;  %s1523_s27 = sld [smem:[#allocation2 + $0x40]] }
  0xac   : > { %s2258_s12 = sld [smem:[#allocation25_spill]]  ;;  %v385_v55 = vmul.f32 %v1037_v19, %v384_v45  ;;  %v375_v61 = vadd.f32 %v374_v52, %v372_v51  ;;  %v1543_v3 = vmax.f32 %v364_v58, 0.0 }
  0xad   : > { %2253 = sst [smem:[#allocation21_spill]] %s1515_s10 }
  0xae   : > { %v395_v53 = vstv %s2254_s28  ;;  %s2259_s20 = sld [smem:[#allocation26_spill]]  ;;  %v386_v63 = vadd.f32 %v385_v55, %v383_v54  ;;  %v1550_v7 = vmax.f32 %v375_v61, 0.0  ;;  %v427_v48 = vmul.f32 %v426_v35, %v1543_v3 }
  0xaf   : > { %2255 = sst [smem:[#allocation22_spill]] %s1518_s15  ;;  %v396_v60 = vmul.f32 %v1037_v19, %v395_v53  ;;  %v1641_v53 = vmul.f32 %v506_v40, %v1543_v3  ;;  %v1652_v58 = vmul.f32 %v546_v46, %v1543_v3  ;;  %v492_v40 = vstv %s1511_s25 }
  0xb0   : > { %2256 = sst [smem:[#allocation23_spill]] %s1521_s24  ;;  %v1559_v11 = vmax.f32 %v386_v63, 0.0 }
  0xb1   : > { %2257 = sst [smem:[#allocation24_spill]] %s1523_s27  ;;  %v397_v4 = vadd.f32 %v396_v60, %v394_v59  ;;  %v410_v59 = vmul.f32 %v409_v47, %v1550_v7 }
  0xb2   : > { %s1526_s29 = sld [smem:[#allocation2 + $0x41]]  ;;  %v399_v62 = vstv %s2258_s12 }
  0xb3   : > { %s2261_s30 = sld [smem:[#allocation27_spill]]  ;;  %v1545_v5 = vmul.f32 %v399_v62, %v343_v57  ;;  %v1573_v19 = vmax.f32 %v397_v4, 0.0  ;;  %v469_v62 = vstv %s1473_s9 }
  0xb4   : > { %s1528_s3 = sld [smem:[#allocation2 + $0x42]]  ;;  %v419_v0 = vstv %s2259_s20 }
  0xb5   : > { %s1530_s4 = sld [smem:[#allocation2 + $0x43]]  ;;  %v1552_v8 = vmul.f32 %v419_v0, %v343_v57 }
  0xb6   : > { %s2264_s8 = sld [smem:[#allocation28_spill]] }
  0xb7   : > { %s1532_s19 = sld [smem:[#allocation2 + $0x44]] }
  0xb8   : > { %2260 = sst [smem:[#allocation25_spill]] %s1526_s29 }
  0xb9   : > { %s2266_s11 = sld [smem:[#allocation29_spill]]  ;;  %v439_v1 = vstv %s2261_s30 }
  0xba   : > { %2262 = sst [smem:[#allocation26_spill]] %s1528_s3  ;;  %v1554_v9 = vmul.f32 %v439_v1, %v343_v57  ;;  %v489_v1 = vstv %s1477_s14 }
  0xbb   : > { %2263 = sst [smem:[#allocation27_spill]] %s1530_s4 }
  0xbc   : > { %s1535_s28 = sld [smem:[#allocation2 + $0x45]]  ;;  %v459_v6 = vstv %s2264_s8 }
  0xbd   : > { %2265 = sst [smem:[#allocation28_spill]] %s1532_s19  ;;  %v1569_v18 = vmul.f32 %v459_v6, %v343_v57  ;;  %v529_v6 = vstv %s1487_s22 }
  0xbe   : > { %s2268_s24 = sld [smem:[#allocation30_spill]] }
  0xbf   : > { %s1539_s3 = sld [smem:[#allocation2 + $0x46]]  ;;  %v479_v10 = vstv %s2266_s11 }
  0xc0   : > { %s2270_s4 = sld [smem:[#allocation31_spill]]  ;;  %v1576_v21 = vmul.f32 %v479_v10, %v343_v57 }
  0xc1   : > { %s1541_s15 = sld [smem:[#allocation2 + $0x47]] }
  0xc2   : > { %2267 = sst [smem:[#allocation29_spill]] %s1535_s28 }
  0xc3   : > { %s2272_s29 = sld [smem:[#allocation32_spill]] }
  0xc4   : > { %s2273_s19 = sld [smem:[#allocation33_spill]]  ;;  %v499_v12 = vstv %s2268_s24 }
  0xc5   : > { %2269 = sst [smem:[#allocation30_spill]] %s1539_s3  ;;  %v1581_v23 = vmul.f32 %v499_v12, %v343_v57 }
  0xc6   : > { %s2274_s12 = sld [smem:[#allocation34_spill]]  ;;  %v539_v14 = vstv %s2270_s4 }
  0xc7   : > { %2271 = sst [smem:[#allocation31_spill]] %s1541_s15  ;;  %v1586_v26 = vmul.f32 %v539_v14, %v343_v57  ;;  %v470_v14 = vmul.f32 %v469_v62, %v1550_v7 }
  0xc8   : > { %s1548_s28 = sld [smem:[#allocation2 + $0x48]] }
  0xc9   : > { %s2275_s20 = sld [smem:[#allocation35_spill]]  ;;  %v403_v15 = vstv %s2272_s29 }
  0xca   : > { %s1557_s30 = sld [smem:[#allocation2 + $0x49]]  ;;  %v423_v16 = vstv %s2273_s19  ;;  %v404_v27 = vmul.f32 %v403_v15, %v354_v2 }
  0xcb   : > { %s2276_s15 = sld [smem:[#allocation36_spill]]  ;;  %v1590_v28 = vmul.f32 %v423_v16, %v354_v2  ;;  %v490_v16 = vmul.f32 %v489_v1, %v1550_v7 }
  0xcc   : > { %s1564_s8 = sld [smem:[#allocation2 + $0x4a]]  ;;  %v443_v17 = vstv %s2274_s12 }
  0xcd   : > { %s2277_s3 = sld [smem:[#allocation37_spill]]  ;;  %v1592_v29 = vmul.f32 %v443_v17, %v354_v2 }
  0xce   : > { %s1571_s27 = sld [smem:[#allocation2 + $0x4b]]  ;;  %v401_v43 = vstv %s1548_s28 }
  0xcf   : > { %s2278_s10 = sld [smem:[#allocation39_spill]]  ;;  %v463_v20 = vstv %s2275_s20  ;;  %v402_v55 = vadd.f32 %v401_v43, %v1545_v5  ;;  %v509_v5 = vstv %s1483_s23 }
  0xd0   : > { %s2279_s11 = sld [smem:[#allocation38_spill]]  ;;  %v1598_v32 = vmul.f32 %v463_v20, %v354_v2  ;;  %v421_v51 = vstv %s1557_s30  ;;  %v412_v20 = vstv %s1494_s1 }
  0xd1   : > { %s1579_s0 = sld [smem:[#allocation2 + $0x4c]]  ;;  %v503_v24 = vstv %s2276_s15  ;;  %v422_v63 = vadd.f32 %v421_v51, %v1552_v8  ;;  %v405_v10 = vadd.f32 %v404_v27, %v402_v55  ;;  %v413_v35 = vmul.f32 %v412_v20, %v1559_v11 }
  0xd2   : > { %s2280_s24 = sld [smem:[#allocation40_spill]]  ;;  %v1608_v38 = vmul.f32 %v503_v24, %v354_v2  ;;  %v441_v60 = vstv %s1564_s8  ;;  %v432_v24 = vstv %s1499_s7  ;;  %v493_v51 = vmul.f32 %v492_v40, %v1559_v11 }
  0xd3   : > { %s2281_s29 = sld [smem:[#allocation41_spill]]  ;;  %v523_v30 = vstv %s2277_s3  ;;  %v442_v8 = vadd.f32 %v441_v60, %v1554_v9  ;;  %v425_v9 = vadd.f32 %v1590_v28, %v422_v63  ;;  %v452_v28 = vstv %s1503_s18 }
  0xd4   : > { %s1588_s4 = sld [smem:[#allocation2 + $0x4d]]  ;;  %v1614_v41 = vmul.f32 %v523_v30, %v354_v2  ;;  %v461_v61 = vstv %s1571_s27  ;;  %v453_v43 = vmul.f32 %v452_v28, %v1559_v11 }
  0xd5   : > { %s2282_s19 = sld [smem:[#allocation42_spill]]  ;;  %v406_v31 = vstv %s2278_s10  ;;  %v462_v12 = vadd.f32 %v461_v61, %v1569_v18  ;;  %v510_v18 = vmul.f32 %v509_v5, %v1550_v7 }
  0xd6   : > { %s2283_s2 = sld [smem:[#allocation43_spill]]  ;;  %v543_v34 = vstv %s2279_s11  ;;  %v407_v44 = vmul.f32 %v406_v31, %v1543_v3  ;;  %v445_v31 = vadd.f32 %v1592_v29, %v442_v8  ;;  %v472_v29 = vstv %s1508_s26 }
  0xd7   : > { %s1595_s12 = sld [smem:[#allocation2 + $0x4e]]  ;;  %v1621_v45 = vmul.f32 %v543_v34, %v354_v2  ;;  %v481_v0 = vstv %s1579_s0  ;;  %v465_v34 = vadd.f32 %v1598_v32, %v462_v12  ;;  %v433_v32 = vmul.f32 %v432_v24, %v1559_v11 }
  0xd8   : > { %s1603_s15 = sld [smem:[#allocation2 + $0x4f]]  ;;  %v446_v36 = vstv %s2280_s24  ;;  %v482_v15 = vadd.f32 %v481_v0, %v1576_v21  ;;  %v530_v21 = vmul.f32 %v529_v6, %v1550_v7  ;;  %v473_v47 = vmul.f32 %v472_v29, %v1559_v11 }
  0xd9   : > { %v466_v37 = vstv %s2281_s29  ;;  %s1610_s20 = sld [smem:[#allocation2 + $0x50]]  ;;  %v1629_v49 = vmul.f32 %v446_v36, %v1543_v3 }
  0xda   : > { %s1617_s10 = sld [smem:[#allocation2 + $0x51]]  ;;  %v1632_v50 = vmul.f32 %v466_v37, %v1543_v3  ;;  %v501_v2 = vstv %s1588_s4  ;;  %v1708_v37 = vmul.f32 %v549_v22, %v1550_v7 }
  0xdb   : > { %v486_v39 = vstv %s2282_s19  ;;  %s2284_s3 = sld [smem:[#allocation44_spill]]  ;;  %v502_v17 = vadd.f32 %v501_v2, %v1581_v23  ;;  %v408_v23 = vadd.f32 %v407_v44, %v405_v10  ;;  %v448_v46 = vadd.f32 %v1629_v49, %v445_v31 }
  0xdc   : > { %v526_v42 = vstv %s2283_s2  ;;  %s1624_s17 = sld [smem:[#allocation2 + $0x52]]  ;;  %v1638_v52 = vmul.f32 %v486_v39, %v1543_v3  ;;  %v428_v39 = vadd.f32 %v427_v48, %v425_v9 }
  0xdd   : > { %s1634_s21 = sld [smem:[#allocation2 + $0x53]]  ;;  %v1644_v54 = vmul.f32 %v526_v42, %v1543_v3  ;;  %v430_v3 = vmul.f32 %v429_v56, %v1550_v7  ;;  %v521_v13 = vstv %s1595_s12  ;;  %v505_v36 = vadd.f32 %v1608_v38, %v502_v17 }
  0xde   : > { %s1646_s13 = sld [smem:[#allocation2 + $0x54]]  ;;  %v522_v27 = vadd.f32 %v521_v13, %v1584_v25  ;;  %v541_v30 = vstv %s1603_s15  ;;  %v485_v25 = vadd.f32 %v1600_v33, %v482_v15 }
  0xdf   : > { %s1654_s16 = sld [smem:[#allocation2 + $0x55]]  ;;  %v542_v42 = vadd.f32 %v541_v30, %v1586_v26  ;;  %v468_v26 = vadd.f32 %v1632_v50, %v465_v34  ;;  %v431_v55 = vadd.f32 %v430_v3, %v428_v39 }
  0xe0   : > { %s1660_s28 = sld [smem:[#allocation2 + $0x56]]  ;;  %v525_v38 = vadd.f32 %v1614_v41, %v522_v27  ;;  %v488_v48 = vadd.f32 %v1638_v52, %v485_v25  ;;  %v508_v41 = vadd.f32 %v1641_v53, %v505_v36  ;;  %v585_v40 = vstv %s1617_s10 }
  0xe1   : > { %v449_v57 = vstv %s2284_s3  ;;  %s1666_s6 = sld [smem:[#allocation2 + $0x57]]  ;;  %v545_v49 = vadd.f32 %v1621_v45, %v542_v42  ;;  %v471_v62 = vadd.f32 %v470_v14, %v468_v26 }
  0xe2   : > { %v1670_v4 = vmul.f32 %v449_v57, %v1550_v7  ;;  %s1674_s27 = sld [smem:[#allocation2 + $0x58]]  ;;  %v411_v7 = vadd.f32 %v410_v59, %v408_v23  ;;  %v528_v60 = vadd.f32 %v1644_v54, %v525_v38  ;;  %v491_v0 = vadd.f32 %v490_v16, %v488_v48 }
  0xe3   : > { %s1679_s9 = sld [smem:[#allocation2 + $0x59]]  ;;  %v511_v1 = vadd.f32 %v510_v18, %v508_v41  ;;  %v434_v54 = vadd.f32 %v433_v32, %v431_v55  ;;  %v548_v6 = vadd.f32 %v1652_v58, %v545_v49  ;;  %v474_v15 = vadd.f32 %v473_v47, %v471_v62 }
  0xe4   : > { %s1685_s22 = sld [smem:[#allocation2 + $0x5a]]  ;;  %v414_v53 = vadd.f32 %v413_v35, %v411_v7  ;;  %v451_v61 = vadd.f32 %v1670_v4, %v448_v46  ;;  %v531_v8 = vadd.f32 %v530_v21, %v528_v60  ;;  %v494_v17 = vadd.f32 %v493_v51, %v491_v0 }
  0xe5   : > { %s1691_s14 = sld [smem:[#allocation2 + $0x5b]]  ;;  %v551_v22 = vadd.f32 %v1708_v37, %v548_v6 }
  0xe6   : > { %s1697_s23 = sld [smem:[#allocation2 + $0x5c]]  ;;  %v454_v14 = vadd.f32 %v453_v43, %v451_v61  ;;  %v563_v29 = vstv %s1660_s28 }
  0xe7   : > { %s2285_s1 = sld [smem:[#allocation21_spill]] }
  0xe8   : > { %s1702_s5 = sld [smem:[#allocation2 + $0x5d]]  ;;  %v615_v48 = vstv %s1674_s27 }
  0xe9   : > { %s2286_s7 = sld [smem:[#allocation24_spill]] }
  0xea   : > { %s1710_s30 = sld [smem:[#allocation2 + $0x5e]]  ;;  %v667_v61 = vstv %s1685_s22 }
  0xeb   : > { %s1715_s18 = sld [smem:[#allocation2 + $0x5f]] }
  0xec   : > { %s2287_s8 = sld [smem:[#allocation25_spill]]  ;;  %v566_v7 = vstv %s1697_s23 }
  0xed   : > { %s2288_s11 = sld [smem:[#allocation22_spill]]  ;;  %v512_v33 = vstv %s2285_s1 }
  0xee   : > { %s1721_s0 = sld [smem:[#allocation2 + $0x60]]  ;;  %v513_v52 = vmul.f32 %v512_v33, %v1559_v11  ;;  %v589_v33 = vstv %s1666_s6  ;;  %v592_v55 = vstv %s1702_s5 }
  0xef   : > { %s2289_s24 = sld [smem:[#allocation26_spill]]  ;;  %v415_v44 = vstv %s2286_s7 }
  0xf0   : > { %s1726_s26 = sld [smem:[#allocation2 + $0x61]]  ;;  %v416_v50 = vmul.f32 %v415_v44, %v1573_v19  ;;  %v514_v20 = vadd.f32 %v513_v52, %v511_v1  ;;  %v611_v44 = vstv %s1624_s17 }
  0xf1   : > { %s2290_s25 = sld [smem:[#allocation27_spill]]  ;;  %v644_v60 = vstv %s1715_s18 }
  0xf2   : > { %s1732_s29 = sld [smem:[#allocation2 + $0x62]]  ;;  %v435_v56 = vstv %s2287_s8  ;;  %v417_v13 = vadd.f32 %v416_v50, %v414_v53  ;;  %v618_v50 = vstv %s1710_s30  ;;  %v663_v53 = vstv %s1646_s13 }
  0xf3   : > { %v532_v57 = vstv %s2288_s11  ;;  %s1737_s4 = sld [smem:[#allocation2 + $0x63]]  ;;  %v436_v45 = vmul.f32 %v435_v56, %v1573_v19  ;;  %v637_v56 = vstv %s1634_s21 }
  0xf4   : > { %s2291_s19 = sld [smem:[#allocation28_spill]]  ;;  %v533_v2 = vmul.f32 %v532_v57, %v1559_v11  ;;  %v1778_v23 = vmax.f32 %v417_v13, 0.0  ;;  %v670_v0 = vstv %s1721_s0 }
  0xf5   : > { %v455_v59 = vstv %s2289_s24  ;;  %s2292_s2 = sld [smem:[#allocation29_spill]]  ;;  %v437_v18 = vadd.f32 %v436_v45, %v434_v54  ;;  %v689_v54 = vstv %s1654_s16 }
  0xf6   : > { %s1743_s12 = sld [smem:[#allocation2 + $0x64]]  ;;  %v456_v4 = vmul.f32 %v455_v59, %v1573_v19  ;;  %v534_v27 = vadd.f32 %v533_v2, %v531_v8  ;;  %v1813_v47 = vmul.f32 %v585_v40, %v1778_v23  ;;  %v1830_v49 = vmul.f32 %v611_v44, %v1778_v23 }
  0xf7   : > { %s2293_s15 = sld [smem:[#allocation23_spill]]  ;;  %v475_v63 = vstv %s2290_s25  ;;  %v438_v25 = vmax.f32 %v437_v18, 0.0  ;;  %v641_v59 = vstv %s1679_s9  ;;  %v1849_v45 = vmul.f32 %v637_v56, %v1778_v23 }
  0xf8   : > { %s1747_s3 = sld [smem:[#allocation2 + $0x65]]  ;;  %v476_v10 = vmul.f32 %v475_v63, %v1573_v19  ;;  %v457_v31 = vadd.f32 %v456_v4, %v454_v14  ;;  %v1868_v4 = vmul.f32 %v663_v53, %v1778_v23  ;;  %v696_v14 = vstv %s1726_s26 }
  0xf9   : > { %s2294_s1 = sld [smem:[#allocation30_spill]]  ;;  %v1810_v26 = vmul.f32 %v563_v29, %v438_v25  ;;  %v1820_v41 = vmul.f32 %v589_v33, %v438_v25  ;;  %v1836_v52 = vmul.f32 %v615_v48, %v438_v25  ;;  %v1857_v2 = vmul.f32 %v641_v59, %v438_v25 }
  0xfa   : > { %s1751_s7 = sld [smem:[#allocation2 + $0x66]]  ;;  %v495_v3 = vstv %s2291_s19  ;;  %v477_v28 = vadd.f32 %v476_v10, %v474_v15  ;;  %v1792_v42 = vmax.f32 %v457_v31, 0.0  ;;  %v1870_v10 = vmul.f32 %v667_v61, %v438_v25 }
  0xfb   : > { %v515_v5 = vstv %s2292_s2  ;;  %s1756_s8 = sld [smem:[#allocation2 + $0x67]]  ;;  %v496_v58 = vmul.f32 %v495_v3, %v1573_v19  ;;  %v693_v3 = vstv %s1691_s14  ;;  %v595_v8 = vstv %s1737_s4 }
  0xfc   : > { %s1761_s11 = sld [smem:[#allocation2 + $0x68]]  ;;  %v516_v9 = vmul.f32 %v515_v5, %v1573_v19  ;;  %v1794_v32 = vmax.f32 %v477_v28, 0.0  ;;  %v1827_v57 = vmul.f32 %v566_v7, %v1792_v42  ;;  %v1846_v63 = vmul.f32 %v592_v55, %v1792_v42 }
  0xfd   : > { %v552_v12 = vstv %s2293_s15  ;;  %s2295_s24 = sld [smem:[#allocation31_spill]]  ;;  %v497_v34 = vadd.f32 %v496_v58, %v494_v17  ;;  %v1855_v1 = vmul.f32 %v618_v50, %v1792_v42  ;;  %v569_v5 = vstv %s1732_s29 }
  0xfe   : > { %s1764_s25 = sld [smem:[#allocation2 + $0x69]]  ;;  %v553_v24 = vmul.f32 %v552_v12, %v1559_v11  ;;  %v517_v35 = vadd.f32 %v516_v9, %v514_v20  ;;  %v559_v11 = vstv %s1610_s20  ;;  %v1865_v6 = vmul.f32 %v644_v60, %v1792_v42 }
  0xff   : > { %v535_v16 = vstv %s2294_s1  ;;  %s1768_s19 = sld [smem:[#allocation2 + $0x6a]]  ;;  %v1797_v43 = vmul.f32 %v559_v11, %v1778_v23  ;;  %v621_v12 = vstv %s1743_s12  ;;  %v1877_v13 = vmul.f32 %v670_v0, %v1792_v42 }
 0x100   : > { %s1772_s2 = sld [smem:[#allocation2 + $0x6b]]  ;;  %v536_v21 = vmul.f32 %v535_v16, %v1573_v19  ;;  %v554_v36 = vadd.f32 %v553_v24, %v551_v22  ;;  %v1804_v38 = vmax.f32 %v517_v35, 0.0  ;;  %v647_v15 = vstv %s1747_s3 }
 0x101   : > { %s1776_s15 = sld [smem:[#allocation2 + $0x6c]]  ;;  %v673_v16 = vstv %s1751_s7  ;;  %v1885_v17 = vmul.f32 %v689_v54, %v1778_v23  ;;  %v1887_v58 = vmul.f32 %v693_v3, %v438_v25  ;;  %v1892_v20 = vmul.f32 %v569_v5, %v1794_v32 }
 0x102   : > { %s1780_s1 = sld [smem:[#allocation2 + $0x6d]]  ;;  %v537_v39 = vadd.f32 %v536_v21, %v534_v27  ;;  %v572_v9 = vstv %s1761_s11  ;;  %v699_v22 = vstv %s1756_s8  ;;  %v1900_v24 = vmul.f32 %v595_v8, %v1794_v32 }
 0x103   : > { %v555_v30 = vstv %s2295_s24  ;;  %s1786_s24 = sld [smem:[#allocation2 + $0x6f]]  ;;  %v1903_v27 = vmul.f32 %v621_v12, %v1794_v32  ;;  %v1912_v23 = vmul.f32 %v647_v15, %v1794_v32  ;;  %v1916_v28 = vmul.f32 %v673_v16, %v1794_v32 }
 0x104   : > { %v556_v37 = vmul.f32 %v555_v30, %v1573_v19  ;;  %s1800_s20 = sld [smem:[#allocation2 + $0x71]]  ;;  %v1802_v19 = vmax.f32 %v497_v34, 0.0  ;;  %v1818_v51 = vmax.f32 %v537_v39, 0.0  ;;  %v598_v18 = vstv %s1764_s25 }
 0x105   : > { %2296 = sst [smem:[#allocation32_spill]] %s1768_s19  ;;  %v1907_v30 = vmul.f32 %v696_v14, %v1792_v42  ;;  %v1928_v25 = vmul.f32 %v699_v22, %v1794_v32 }
 0x106   : > { %s1783_s19 = sld [smem:[#allocation2 + $0x6e]]  ;;  %v557_v46 = vadd.f32 %v556_v37, %v554_v36  ;;  %v650_v31 = vstv %s1772_s2  ;;  %v1922_v35 = vmul.f32 %v572_v9, %v1802_v19  ;;  %v1925_v11 = vmul.f32 %v598_v18, %v1802_v19 }
 0x107   : > { %2297 = sst [smem:[#allocation33_spill]] %s1776_s15  ;;  %v1942_v42 = vmul.f32 %v650_v31, %v1802_v19 }
 0x108   : > { %s1790_s15 = sld [smem:[#allocation2 + $0x70]]  ;;  %v1843_v62 = vmax.f32 %v557_v46, 0.0  ;;  %v702_v36 = vstv %s1780_s1 }
 0x109   : > { %s1808_s10 = sld [smem:[#allocation2 + $0x72]]  ;;  %v601_v39 = vstv %s1786_s24  ;;  %v1954_v48 = vmul.f32 %v702_v36, %v1802_v19 }
 0x10a   : > { %s1816_s28 = sld [smem:[#allocation2 + $0x73]]  ;;  %v653_v33 = vstv %s1800_s20  ;;  %v1963_v50 = vmul.f32 %v601_v39, %v1804_v38 }
 0x10b   : > { %s1824_s17 = sld [smem:[#allocation2 + $0x74]] }
 0x10c   : > { %s1834_s6 = sld [smem:[#allocation2 + $0x75]]  ;;  %v575_v37 = vstv %s1783_s19 }
 0x10d   : > { %s1841_s21 = sld [smem:[#allocation2 + $0x76]]  ;;  %v1960_v56 = vmul.f32 %v575_v37, %v1804_v38 }
 0x10e   : > { %s1852_s27 = sld [smem:[#allocation2 + $0x77]]  ;;  %v627_v40 = vstv %s1790_s15 }
 0x10f   : > { %s1861_s13 = sld [smem:[#allocation2 + $0x78]]  ;;  %v679_v7 = vstv %s1808_s10  ;;  %v1966_v59 = vmul.f32 %v627_v40, %v1804_v38 }
 0x110   : > { %s1872_s9 = sld [smem:[#allocation2 + $0x79]]  ;;  %v705_v55 = vstv %s1816_s28  ;;  %v1976_v61 = vmul.f32 %v679_v7, %v1804_v38 }
 0x111   : > { %s2298_s16 = sld [smem:[#allocation32_spill]]  ;;  %v578_v44 = vstv %s1824_s17  ;;  %v1989_v8 = vmul.f32 %v705_v55, %v1804_v38 }
 0x112   : > { %s1880_s22 = sld [smem:[#allocation2 + $0x7a]]  ;;  %v604_v46 = vstv %s1834_s6  ;;  %v1983_v3 = vmul.f32 %v578_v44, %v1818_v51 }
 0x113   : > { %s2299_s14 = sld [smem:[#allocation33_spill]]  ;;  %v630_v60 = vstv %s1841_s21  ;;  %v1986_v5 = vmul.f32 %v604_v46, %v1818_v51 }
 0x114   : > { %s1889_s23 = sld [smem:[#allocation2 + $0x7b]]  ;;  %v656_v53 = vstv %s1852_s27  ;;  %v1996_v15 = vmul.f32 %v630_v60, %v1818_v51 }
 0x115   : > { %s1897_s5 = sld [smem:[#allocation2 + $0x7c]]  ;;  %v682_v0 = vstv %s1861_s13  ;;  %v2004_v22 = vmul.f32 %v656_v53, %v1818_v51 }
 0x116   : > { %s1909_s30 = sld [smem:[#allocation2 + $0x7d]]  ;;  %v708_v16 = vstv %s1872_s9 }
 0x117   : > { %v624_v21 = vstv %s2298_s16  ;;  %s1919_s18 = sld [smem:[#allocation2 + $0x80]]  ;;  %v2021_v39 = vmul.f32 %v708_v16, %v1818_v51 }
 0x118   : > { %s1931_s0 = sld [smem:[#allocation2 + $0x81]]  ;;  %v1936_v29 = vmul.f32 %v624_v21, %v1802_v19  ;;  %v581_v21 = vstv %s1880_s22 }
 0x119   : > { %v676_v34 = vstv %s2299_s14  ;;  %s1939_s26 = sld [smem:[#allocation2 + $0x82]] }
 0x11a   : > { %v1946_v32 = vmul.f32 %v676_v34, %v1802_v19  ;;  %s1949_s29 = sld [smem:[#allocation2 + $0x83]]  ;;  %v1972_v19 = vmul.f32 %v653_v33, %v1804_v38  ;;  %v2007_v38 = vmul.f32 %v682_v0, %v1818_v51  ;;  %v607_v7 = vstv %s1889_s23 }
 0x11b   : > { %s1957_s4 = sld [smem:[#allocation2 + $0x84]]  ;;  %v633_v46 = vstv %s1897_s5 }
 0x11c   : > { %s1969_s12 = sld [smem:[#allocation2 + $0x85]]  ;;  %v634_v60 = vmul.f32 %v633_v46, %v1843_v62 }
 0x11d   : > { %s1979_s3 = sld [smem:[#allocation2 + $0x7e]]  ;;  %v561_v54 = vstv %s1919_s18 }
 0x11e   : > { %s1991_s7 = sld [smem:[#allocation2 + $0x7f]]  ;;  %v562_v12 = vadd.f32 %v561_v54, %v1797_v43  ;;  %v587_v14 = vstv %s1931_s0 }
 0x11f   : > { %s1999_s8 = sld [smem:[#allocation2 + $0x86]]  ;;  %v588_v9 = vadd.f32 %v587_v14, %v1813_v47  ;;  %v613_v18 = vstv %s1939_s26 }
 0x120   : > { %s2009_s11 = sld [smem:[#allocation2 + $0x87]]  ;;  %v565_v43 = vadd.f32 %v1810_v26, %v562_v12  ;;  %v614_v31 = vadd.f32 %v613_v18, %v1830_v49  ;;  %v639_v34 = vstv %s1949_s29 }
 0x121   : > { %s2015_s25 = sld [smem:[#allocation2 + $0x88]]  ;;  %v591_v47 = vadd.f32 %v1820_v41, %v588_v9  ;;  %v640_v36 = vadd.f32 %v639_v34, %v1849_v45  ;;  %v665_v37 = vstv %s1957_s4 }
 0x122   : > { %s2023_s19 = sld [smem:[#allocation2 + $0x89]]  ;;  %v568_v26 = vadd.f32 %v1827_v57, %v565_v43  ;;  %v617_v40 = vadd.f32 %v1836_v52, %v614_v31  ;;  %v666_v49 = vadd.f32 %v665_v37, %v1868_v4  ;;  %v691_v33 = vstv %s1969_s12 }
 0x123   : > { %s2029_s2 = sld [smem:[#allocation2 + $0x8a]]  ;;  %v594_v41 = vadd.f32 %v1846_v63, %v591_v47  ;;  %v643_v45 = vadd.f32 %v1857_v2, %v640_v36  ;;  %v692_v44 = vadd.f32 %v691_v33, %v1885_v17  ;;  %v582_v4 = vmul.f32 %v581_v21, %v1843_v62 }
 0x124   : > { %s2035_s15 = sld [smem:[#allocation2 + $0x8b]]  ;;  %v571_v51 = vadd.f32 %v1892_v20, %v568_v26  ;;  %v620_v57 = vadd.f32 %v1855_v1, %v617_v40  ;;  %v669_v52 = vadd.f32 %v1870_v10, %v666_v49  ;;  %v608_v1 = vmul.f32 %v607_v7, %v1843_v62 }
 0x125   : > { %s2041_s1 = sld [smem:[#allocation2 + $0x8c]]  ;;  %v597_v63 = vadd.f32 %v1900_v24, %v594_v41  ;;  %v646_v2 = vadd.f32 %v1865_v6, %v643_v45  ;;  %v695_v17 = vadd.f32 %v1887_v58, %v692_v44  ;;  %v685_v54 = vstv %s1979_s3 }
 0x126   : > { %s2047_s24 = sld [smem:[#allocation2 + $0x8d]]  ;;  %v574_v20 = vadd.f32 %v1922_v35, %v571_v51  ;;  %v623_v10 = vadd.f32 %v1903_v27, %v620_v57  ;;  %v672_v55 = vadd.f32 %v1877_v13, %v669_v52  ;;  %v659_v27 = vstv %s1909_s30 }
 0x127   : > { %s2053_s20 = sld [smem:[#allocation2 + $0x8e]]  ;;  %v600_v24 = vadd.f32 %v1925_v11, %v597_v63  ;;  %v649_v6 = vadd.f32 %v1912_v23, %v646_v2  ;;  %v698_v58 = vadd.f32 %v1907_v30, %v695_v17  ;;  %v711_v12 = vstv %s1991_s7 }
 0x128   : > { %s2059_s10 = sld [smem:[#allocation2 + $0x8f]]  ;;  %v577_v35 = vadd.f32 %v1960_v56, %v574_v20  ;;  %v626_v53 = vadd.f32 %v1936_v29, %v623_v10  ;;  %v675_v13 = vadd.f32 %v1916_v28, %v672_v55  ;;  %v712_v16 = vmul.f32 %v711_v12, %v1843_v62 }
 0x129   : > { %s2065_s28 = sld [smem:[#allocation2 + $0x90]]  ;;  %v603_v11 = vadd.f32 %v1963_v50, %v600_v24  ;;  %v652_v0 = vadd.f32 %v1942_v42, %v649_v6  ;;  %v701_v23 = vadd.f32 %v1928_v25, %v698_v58  ;;  %v660_v42 = vmul.f32 %v659_v27, %v1843_v62 }
 0x12a   : > { %s2071_s17 = sld [smem:[#allocation2 + $0x91]]  ;;  %v580_v30 = vadd.f32 %v1983_v3, %v577_v35  ;;  %v629_v56 = vadd.f32 %v1966_v59, %v626_v53  ;;  %v678_v29 = vadd.f32 %v1946_v32, %v675_v13  ;;  %v686_v59 = vmul.f32 %v685_v54, %v1843_v62 }
 0x12b   : > { %s2077_s6 = sld [smem:[#allocation2 + $0x92]]  ;;  %v606_v28 = vadd.f32 %v1986_v5, %v603_v11  ;;  %v655_v50 = vadd.f32 %v1972_v19, %v652_v0  ;;  %v704_v25 = vadd.f32 %v1954_v48, %v701_v23  ;;  %v715_v18 = vstv %s1999_s8 }
 0x12c   : > { %s2083_s21 = sld [smem:[#allocation2 + $0x93]]  ;;  %v583_v14 = vadd.f32 %v582_v4, %v580_v30  ;;  %v632_v3 = vadd.f32 %v1996_v15, %v629_v56  ;;  %v681_v32 = vadd.f32 %v1976_v61, %v678_v29  ;;  %v753_v21 = vstv %s2015_s25 }
 0x12d   : > { %s2088_s27 = sld [smem:[#allocation2 + $0x95]]  ;;  %v609_v5 = vadd.f32 %v608_v1, %v606_v28  ;;  %v658_v19 = vadd.f32 %v2004_v22, %v655_v50  ;;  %v707_v48 = vadd.f32 %v1989_v8, %v704_v25  ;;  %v734_v8 = vstv %s2009_s11 }
 0x12e   : > { %s2093_s13 = sld [smem:[#allocation2 + $0x94]]  ;;  %v584_v15 = vmax.f32 %v583_v14, 0.0  ;;  %v635_v9 = vadd.f32 %v634_v60, %v632_v3  ;;  %v684_v61 = vadd.f32 %v2007_v38, %v681_v32  ;;  %v719_v31 = vstv %s2023_s19  ;;  %s1222_s19 = smov [#allocation7]  }
 0x12f   : > { %s2097_s9 = sld [smem:[#allocation2 + $0x98]]  ;;  %v661_v43 = vadd.f32 %v660_v42, %v658_v19  ;;  %v710_v22 = vadd.f32 %v2021_v39, %v707_v48  ;;  %v610_v62 = vmax.f32 %v609_v5, 0.0  ;;  %v738_v34 = vstv %s2029_s2  ;;  %s1151_s2 = sshll.u32 %s1222_s19, 4  ;;  %s1152_s2 = int_to_ptr.vmem [resolvable:$false] %s1151_s2 }
 0x130   : > { %s2102_s16 = sld [smem:[#allocation2 + $0x99]]  ;;  %v757_v47 = vstv %s2035_s15  ;;  %v636_v38 = vmax.f32 %v635_v9, 0.0  ;;  %v687_v36 = vadd.f32 %v686_v59, %v684_v61  ;;  %v722_v37 = vstv %s2041_s1  ;;  %s1153_s15 = scalar_lea.vmem %s1152_s2, 768 }
 0x131   : > { %s2107_s22 = sld [smem:[#allocation2 + $0x9a]]  ;;  %v741_v26 = vstv %s2047_s24  ;;  %v716_v39 = vmul.f32 %v715_v18, %v584_v15  ;;  %v725_v40 = vstv %s2059_s10  ;;  %v744_v49 = vstv %s2065_s28 }
 0x132   : > { %s2111_s14 = sld [smem:[#allocation2 + $0x96]]  ;;  %v760_v33 = vstv %s2053_s20  ;;  %v662_v41 = vmax.f32 %v661_v43, 0.0  ;;  %v713_v7 = vadd.f32 %v712_v16, %v710_v22  ;;  %v735_v45 = vmul.f32 %v734_v8, %v584_v15 }
 0x133   : > { %s2116_s23 = sld [smem:[#allocation2 + $0x97]]  ;;  %v763_v44 = vstv %s2071_s17  ;;  %v720_v51 = vmul.f32 %v719_v31, %v610_v62  ;;  %v728_v57 = vstv %s2077_s6  ;;  %v739_v46 = vmul.f32 %v738_v34, %v610_v62 }
 0x134   : > { %v754_v52 = vmul.f32 %v753_v21, %v584_v15  ;;  %v688_v4 = vmax.f32 %v687_v36, 0.0  ;;  %v723_v2 = vmul.f32 %v722_v37, %v636_v38  ;;  %v731_v17 = vstv %s2088_s27  ;;  %s2300_s5 = sld [smem:[#allocation15_spill]] }
 0x135   : > { %v717_v63 = vstv %s2097_s9  ;;  %v742_v10 = vmul.f32 %v741_v26, %v636_v38  ;;  %v758_v55 = vmul.f32 %v757_v47, %v610_v62  ;;  %v714_v24 = vmax.f32 %v713_v7, 0.0  ;;  %s2301_s30 = sld [smem:[#allocation20_spill]] }
 0x136   : > { %v718_v20 = vadd.f32 %v717_v63, %v716_v39  ;;  %v736_v1 = vstv %s2102_s16  ;;  %v726_v60 = vmul.f32 %v725_v40, %v662_v41  ;;  %v747_v53 = vstv %s2083_s21  ;;  %s2303_s26 = sld [smem:[#allocation18_spill]] }
 0x137   : > { %v737_v6 = vadd.f32 %v736_v1, %v735_v45  ;;  %v755_v58 = vstv %s2107_s22  ;;  %v761_v13 = vmul.f32 %v760_v33, %v636_v38  ;;  %v729_v11 = vmul.f32 %v728_v57, %v688_v4  ;;  %s2304_s7 = sld [smem:[#allocation47_spill]] }
 0x138   : > { %v721_v35 = vadd.f32 %v720_v51, %v718_v20  ;;  %v756_v27 = vadd.f32 %v755_v58, %v754_v52  ;;  %v745_v54 = vmul.f32 %v744_v49, %v662_v41  ;;  %v766_v23 = vstv %s2093_s13 }
 0x139   : > { %v740_v0 = vadd.f32 %v739_v46, %v737_v6  ;;  %v750_v56 = vstv %s2111_s14  ;;  %v764_v12 = vmul.f32 %v763_v44, %v662_v41  ;;  %v748_v50 = vmul.f32 %v747_v53, %v688_v4 }
 0x13a   : > { %v724_v30 = vadd.f32 %v723_v2, %v721_v35  ;;  %v759_v29 = vadd.f32 %v758_v55, %v756_v27  ;;  %v769_v42 = vstv %s2116_s23  ;;  %v732_v14 = vmul.f32 %v731_v17, %v714_v24  ;;  %s1040_s18 = sshll.u32 %s2300_s5, 7 }
 0x13b   : > { %v743_v28 = vadd.f32 %v742_v10, %v740_v0  ;;  %v767_v32 = vmul.f32 %v766_v23, %v688_v4  ;;  %v751_v5 = vmul.f32 %v750_v56, %v714_v24  ;;  %v770_v16 = vmul.f32 %v769_v42, %v714_v24  ;;  %s2302_s0 = smul.u32 24, %s2301_s30  ;;  %s778_s11 = scalar_lea.sflag [#allocation4], %s2301_s30 }
 0x13c   : > { %v727_v25 = vadd.f32 %v726_v60, %v724_v30  ;;  %v762_v3 = vadd.f32 %v761_v13, %v759_v29  ;;  %p2305_p13 = scmp.ne.s32.totalorder %s2303_s26, 0 }
 0x13d   : > { %v746_v59 = vadd.f32 %v745_v54, %v743_v28  ;;  %s172_s29 = scalar_lea.vmem [#allocation7], %s2302_s0  ;;  %s2134_s8 = scalar_lea.hbm %s2304_s7, %s1040_s18 }
 0x13e   : > { %v730_v19 = vadd.f32 %v729_v11, %v727_v25  ;;  %v765_v48 = vadd.f32 %v764_v12, %v762_v3  ;;  %s790_s4 = sshll.u32 %s172_s29, 4  ;;  %s2136_s4 = int_to_ptr.vmem [resolvable:$true] %s790_s4 }
 0x13f   : > { %v749_v15 = vadd.f32 %v748_v50, %v746_v59  ;;  %s1147_s25 = scalar_lea.vmem %s2136_s4, 384  ;;  %p1154_p9 = scmp.lt.s32.totalorder %s2136_s4, %s1152_s2 }
 0x140   : > { %v733_v9 = vadd.f32 %v732_v14, %v730_v19  ;;  %v768_v61 = vadd.f32 %v767_v32, %v765_v48  ;;  %p1148_p12 = scmp.ne.s32.totalorder %s2136_s4, %s1147_s25  ;;  %p1155_p10 = scmp.lt.s32.totalorder %s1153_s15, %s1147_s25 }
 0x141   : > { %v752_v18 = vadd.f32 %v751_v5, %v749_v15 }
 0x142   : > { %v771_v43 = vadd.f32 %v770_v16, %v768_v61  ;;  %772 = vst [vmem:[%s172_s29] sm:$0xff] %v733_v9  ;;  %p1149_p7 = pnand %p1148_p12, %p2305_p13  ;;  %p1156_p2 = por %p1155_p10, %p1154_p9 }
 0x143   : > { %1038 = vst [vmem:[%s172_s29 + $0x8] sm:$0xff] %v752_v18 }
 0x144   : > { %1039 = vst [vmem:[%s172_s29 + $0x10] sm:$0xff] %v771_v43  ;;  %p1150_p8 = pneg %p1149_p7 }
 0x146   : > { %p1157_p0 = pnand %p1156_p2, %p1150_p8 }
 0x148   : > { %1160 = shalt.err (!%p1157_p0)
}
 0x149   : > { %s1161_s1 = scalar_lea.hbm %s2134_s8, 384  ;;  %s1165_s10 = scalar_lea.hbm %s2304_s7, 768 }
 0x14a   : > { %p1162_p3 = scmp.ne.s32.totalorder %s2134_s8, %s1161_s1  ;;  %p1166_p4 = scmp.lt.s32.totalorder %s2134_s8, %s2304_s7 }
 0x14b   : > { %p1167_p6 = scmp.lt.s32.totalorder %s1165_s10, %s1161_s1 }
 0x14c   : > { %p1163_p5 = pnand %p1162_p3, %p2305_p13 }
 0x14d   : > { %p1168_p11 = por %p1167_p6, %p1166_p4 }
 0x14e   : > { %p1164_p1 = pneg %p1163_p5 }
 0x150   : > { %p1169_p12 = pnand %p1168_p11, %p1164_p1 }
 0x152   : > { %1172 = shalt.err (!%p1169_p12)
}
 0x153   : > { %s1223_s6 = smov 128   ;;  %s1224_s21 = smov 256  }
 0x154   : > { %s1225_s27 = smov 8  }
 0x155   : > { %1051 = dma.vmem_to_hbm [thread:$0]  (%p2305_p13), %s2136_s4, 384, %s2134_s8, %s778_s11, %s1223_s6, %s1224_s21, %s1225_s27  }
 0x156 PF: > { %s2306_s13 = sld [smem:[#allocation11_spill]] }
 0x157   : > { %s2307_s9 = sld [smem:[#allocation19_spill]] }
 0x158   : > { %s2308_s16 = sld [smem:[#allocation14_spill]] }
 0x15c   : > { %s805_s22 = sand.u32 1, %s2306_s13  }
 0x15d   : > { %p2309_p7 = scmp.ne.s32.totalorder %s2307_s9, 0  ;;  %s806_s14 = scalar_lea.sflag [#allocation4], %s805_s22 }
 0x15e   : > { %p2310_p8 = scmp.ge.s32.totalorder %s2308_s16, 2 }
 0x160   : > { %p1062_p9 = pnand %p2310_p8, %p2309_p7 }
 0x162   : > { %p1063_p10 = pneg %p1062_p9 }
 0x164   : > { %1198 = dma.done.wait (%p1063_p10), %s806_s14, 384  }
 0x165   : > { %1200 = vsyncadd (%p1063_p10), %s806_s14, 4294966912  ;;  %s2311_s12 = sld [smem:[#allocation16_spill]] }
 0x166   : > { %s2312_s9 = sld [smem:[#allocation12_spill]] }
 0x167   : > { %s2313_s10 = sld [smem:[#allocation13_spill]] }
 0x168   : > { %s2314_s11 = sld [smem:[#allocation17_spill]] }
 0x16b   : > { %p16_p2 = scmp.ge.s32.totalorder %s2311_s12, 4  }
 0x16d   :  { %18 = sbr.rel (!%p16_p2) target bundleno = 10 (0xa), region = 82 }
 0x172   :  { %811 = vsyncpa [#allocation3], 1 }
 0x173   :  { %813 = vsyncpa [#allocation3 + $0x1], 1 }
 0x174   :  { %814 = vsyncpa [#allocation4], 1 }
 0x175   :  { %816 = vsyncpa [#allocation4 + $0x1], 1 }
 0x176   :  { %817 = vsyncpa [#allocation5], 1 }
 0x177   :  { %819 = vsyncpa [#allocation5 + $0x1], 1 }

</bundles_post_ra>
